<compile_context>
chip_gen: v6e
topology: v6e:2x2x1
jax: 0.10.0
libtpu: 0.0.40
codegen_flags: <defaults>
</compile_context>

<pallas_src>
import math

import numpy as np
import jax
import jax.numpy as jnp
from jax.experimental import pallas as pl
from jax.experimental.pallas import tpu as pltpu


# ----------------------------------------------------------------------------
# Host-side (static) bucket-id computation — mirrors the PyTorch reference.
# ----------------------------------------------------------------------------
class METHOD:
    EUCLIDEAN = 0
    QUANT = 1
    PRODUCT = 3
    CROSS_ROWS = 41
    CROSS_COLS = 42


def _piecewise_index_np(relative_position, alpha, beta, gamma):
    rp = relative_position.astype(np.float64)
    rp_abs = np.abs(rp)
    mask = rp_abs <= alpha
    # avoid log(<=0) warnings where masked (value unused there)
    safe_abs = np.maximum(rp_abs, alpha)
    y = np.sign(rp) * np.minimum(
        np.round(alpha + np.log(safe_abs / alpha) / math.log(gamma / alpha) * (beta - alpha)),
        beta,
    )
    idx = np.where(mask, np.round(rp), y).astype(np.int64)
    return idx


def _get_absolute_positions_np(height, width):
    rows = np.arange(height).reshape(height, 1).repeat(width, axis=1)
    cols = np.arange(width).reshape(1, width).repeat(height, axis=0)
    return np.stack([rows, cols], axis=2)  # (H, W, 2)


def get_bucket_ids_2d_np(method, height, width, skip, alpha, beta, gamma):
    assert skip == 0, "this script only exercises skip=0 (no class token)"
    pos = _get_absolute_positions_np(height, width)
    L = height * width
    pos1 = pos.reshape(L, 1, 2)
    pos2 = pos.reshape(1, L, 2)
    diff = pos1 - pos2  # (L, L, 2)
    beta_int = int(beta)

    if method == METHOD.PRODUCT:
        S = 2 * beta_int + 1
        r = _piecewise_index_np(diff[:, :, 0], alpha, beta, gamma) + beta_int
        c = _piecewise_index_np(diff[:, :, 1], alpha, beta, gamma) + beta_int
        bucket_ids = r * S + c
        num_buckets = (2 * beta_int + 1) ** 2
    elif method == METHOD.EUCLIDEAN:
        dis = np.round(np.sqrt((diff.astype(np.float64) ** 2).sum(2)))
        bucket_ids = _piecewise_index_np(dis, alpha, beta, gamma) + beta_int
        num_buckets = 2 * beta_int + 1
    elif method == METHOD.QUANT:
        dis = (diff ** 2).sum(2)
        bucket_ids = _piecewise_index_np(dis, alpha, beta, gamma) + beta_int
        num_buckets = 2 * beta_int + 1
    elif method == METHOD.CROSS_ROWS:
        bucket_ids = _piecewise_index_np(diff[:, :, 0], alpha, beta, gamma) + beta_int
        num_buckets = 2 * beta_int + 1
    elif method == METHOD.CROSS_COLS:
        bucket_ids = _piecewise_index_np(diff[:, :, 1], alpha, beta, gamma) + beta_int
        num_buckets = 2 * beta_int + 1
    else:
        raise NotImplementedError(method)

    return bucket_ids.astype(np.int32), num_buckets


def _round_up(x, m):
    return ((x + m - 1) // m) * m


# ----------------------------------------------------------------------------
# Pallas kernel: contextual + transposed RPE forward, one (head, batch) block
# per grid step.
# ----------------------------------------------------------------------------
def _rpe_ctx_transpose_kernel(bkt_ref, x_ref, wrep_ref, o_ref):
    # bkt_ref:  (L_pad, J_pad)   int32   static, constant index_map -> resident
    # x_ref:    (L_pad, D)       bf16/f32
    # wrep_ref: (D, NB*128)      bf16/f32  per-head, bucket columns replicated
    #                                      128x along lanes
    # o_ref:    (L_pad, J_pad)   float32   lane-dense output slab
    nbc = wrep_ref.shape[-1]
    nb = nbc // 128
    rows = o_ref.shape[0]
    n_strips = o_ref.shape[-1] // 128

    # Single MXU pass: t_rep[:, n*128:(n+1)*128] is t[:, n] already broadcast
    # across all 128 lanes (because w_rep's columns are lane-replicated).
    t_rep = jnp.dot(x_ref[...], wrep_ref[...],
                    preferred_element_type=jnp.float32)     # (L_pad, NB*128)

    # Gather out[m, j] = t[m, bkt[m, j]] as a pure-VPU select-accumulate over
    # the NB (static, small) buckets, processed in 128-lane j-strips so vreg
    # pressure stays bounded and every store is an unmasked, lane-dense vst.
    # Padded columns carry bucket id -1 -> never match -> stay zero.
    for s in range(n_strips):
        sl = slice(s * 128, (s + 1) * 128)
        bkt_s = bkt_ref[:, sl]                               # (rows, 128) i32
        acc = jnp.zeros((rows, 128), jnp.float32)
        for n in range(nb):
            acc = acc + jnp.where(bkt_s == n,
                                  t_rep[:, n * 128:(n + 1) * 128], 0.0)
        o_ref[:, sl] = acc.astype(o_ref.dtype)


def rpe2d_forward(x, lookup_table_weight, rp_bucket, mxu_dtype=jnp.bfloat16):
    """Contextual, transposed RPE2D forward.

    x:                    (B, H, L, D) float32
    lookup_table_weight:  (H, D, NB)   float32
    rp_bucket:            (L, L)       int32
    mxu_dtype:            dtype for the matmul operands (default bf16, the
                          v6e/v7x fast path); accumulation, the select loop
                          and the output stay float32.  Pass None for f32
                          operands.
    returns:              (B, H, L, L) float32
    """
    B, H, L, D = x.shape
    NB = lookup_table_weight.shape[-1]
    L_pad = _round_up(L, 8)      # sublane alignment for rows
    J_pad = _round_up(L, 128)    # lane-dense columns -> unmasked vector stores
    NBC = NB * 128               # lane-replicated bucket columns

    x_in = x
    w = lookup_table_weight
    if mxu_dtype is not None:
        x_in = x_in.astype(mxu_dtype)
        w = w.astype(mxu_dtype)
    if L_pad != L:
        x_in = jnp.pad(x_in, ((0, 0), (0, 0), (0, L_pad - L), (0, 0)))

    # Replicate each bucket column 128x along lanes: w_rep[h, d, n*128+k] = W[h, d, n].
    # The MXU then emits already lane-replicated per-bucket tiles -> no XLU
    # broadcasts inside the kernel.
    w_rep = jnp.repeat(w, 128, axis=-1)                      # (H, D, NB*128)

    # Bucket table: single (L_pad, J_pad) copy (no batch tiling), padded with
    # -1 sentinel (never matches a bucket id).
    bkt = rp_bucket.astype(jnp.int32)
    if L_pad != L or J_pad != L:
        bkt = jnp.pad(bkt, ((0, L_pad - L), (0, J_pad - L)), constant_values=-1)

    # Per-step VMEM footprint (bkt resident + double-buffered x/w/out + the
    # matmul intermediate); give the compiler explicit headroom so
    # double-buffering survives realistic (B, L) on v5e/v7x scoped defaults.
    op_itemsize = jnp.dtype(mxu_dtype if mxu_dtype is not None else jnp.float32).itemsize
    est_bytes = (
        L_pad * J_pad * 4                # bkt (resident)
        + 2 * L_pad * D * op_itemsize    # x block (double-buffered)
        + 2 * D * NBC * op_itemsize      # w_rep block
        + 2 * L_pad * J_pad * 4          # out block
        + L_pad * NBC * 4                # t_rep matmul intermediate
    )
    vmem_limit = int(min(max(4 * est_bytes, 16 * 1024 * 1024), 48 * 1024 * 1024))

    grid_spec = pltpu.PrefetchScalarGridSpec(
        num_scalar_prefetch=0,
        grid=(H, B),
        in_specs=[
            # bucket table: constant block index -> stays resident, one DMA total
            pl.BlockSpec((L_pad, J_pad), lambda h, b: (0, 0)),
            # x in native (B, H, L, D) layout: one (L_pad, D) slab per (h, b)
            pl.BlockSpec((None, None, L_pad, D), lambda h, b: (b, h, 0, 0)),
            # weight: one (D, NB*128) slab per head (resident across the b axis)
            pl.BlockSpec((None, D, NBC), lambda h, b: (h, 0, 0)),
        ],
        out_specs=pl.BlockSpec((None, None, L_pad, J_pad), lambda h, b: (b, h, 0, 0)),
    )

    out_p = pl.pallas_call(
        _rpe_ctx_transpose_kernel,
        out_shape=jax.ShapeDtypeStruct((B, H, L_pad, J_pad), jnp.float32),
        grid_spec=grid_spec,
        compiler_params=pltpu.CompilerParams(
            dimension_semantics=("parallel", "parallel"),
            vmem_limit_bytes=vmem_limit,
        ),
    )(bkt, x_in, w_rep)

    # Output already in (B, H, ...) order — only strip padding (no transpose).
    if L_pad != L or J_pad != L:
        out_p = out_p[:, :, :L, :L]
    return out_p


# ----------------------------------------------------------------------------
# Driver
# ----------------------------------------------------------------------------
if __name__ == "__main__":
    # Module hyper-parameters (small, consistent with the forward contract).
    # NOTE: at this toy size the kernel measures fixed overhead, not the
    # gather/DMA design; benchmark at representative (B, L, H) before tuning.
    num_heads = 4
    head_dim = 32
    height = width = 8
    L = height * width            # sequence length (no class token -> skip=0)
    B = 2
    method = METHOD.PRODUCT
    alpha, beta, gamma = 1.0, 2.0, 8.0

    rp_bucket_np, num_buckets = get_bucket_ids_2d_np(
        method, height, width, skip=0, alpha=alpha, beta=beta, gamma=gamma
    )
    assert num_buckets == (2 * int(beta) + 1) ** 2

    # Deterministic parameter / input initialization.
    key = jax.random.PRNGKey(0)
    kx, kw = jax.random.split(key)
    x = jax.random.normal(kx, (B, num_heads, L, head_dim), dtype=jnp.float32)
    # lookup_table_weight: (num_heads, head_dim, num_buckets)  (transposed+contextual)
    lookup_table_weight = 0.02 * jax.random.normal(
        kw, (num_heads, head_dim, num_buckets), dtype=jnp.float32
    )
    rp_bucket = jnp.asarray(rp_bucket_np, dtype=jnp.int32)

    fwd = jax.jit(rpe2d_forward)
    out = fwd(x, lookup_table_weight, rp_bucket)
    out = jax.block_until_ready(out)
    assert out.shape == (B, num_heads, L, L)

    # Pure-numpy reference check of the same forward semantics.
    t_ref = np.einsum(
        "bhld,hdn->bhln",
        np.asarray(x, dtype=np.float64),
        np.asarray(lookup_table_weight, dtype=np.float64),
    )  # (B, H, L, NB)
    ref = t_ref[:, :, np.arange(L)[:, None], rp_bucket_np]  # (B, H, L, L)
    # Tolerance accounts for bf16 MXU operands (f32 accumulation, exact f32
    # select/accumulate path).
    np.testing.assert_allclose(np.asarray(out), ref, rtol=2e-2, atol=3e-3)

    print("KERNEL_OK")
</pallas_src>

<mosaic_0001>
module attributes {stable_mosaic.version = 11 : i64} {
  func.func @_rpe_ctx_transpose_kernel(%arg0: i32, %arg1: i32, %arg2: memref<64x128xi32, #tpu.memory_space<vmem>>, %arg3: memref<1x1x64x32xbf16, #tpu.memory_space<vmem>>, %arg4: memref<1x32x3200xbf16, #tpu.memory_space<vmem>>, %arg5: memref<1x1x64x128xf32, #tpu.memory_space<vmem>>) attributes {dimension_semantics = [#tpu.dimension_semantics<parallel>, #tpu.dimension_semantics<parallel>], iteration_bounds = array<i64: 4, 2>, scalar_prefetch = 0 : i64, scratch_operands = 0 : i64, tpu.core_type = #tpu.core_type<tc>, window_params = [{pipeline_mode = #tpu.pipeline_mode<synchronous>, transform_indices = @transform_0, window_bounds = array<i64: 64, 128>}, {transform_indices = @transform_1, window_bounds = array<i64: 1, 1, 64, 32>}, {transform_indices = @transform_2, window_bounds = array<i64: 1, 32, 3200>}, {transform_indices = @transform_3, window_bounds = array<i64: 1, 1, 64, 128>}]} {
    %c0 = arith.constant 0 : index
    %c0_0 = arith.constant 0 : index
    %c0_1 = arith.constant 0 : index
    %c0_2 = arith.constant 0 : index
    %0 = vector.load %arg3[%c0, %c0_0, %c0_1, %c0_2] : memref<1x1x64x32xbf16, #tpu.memory_space<vmem>>, vector<1x1x64x32xbf16>
    %1 = vector.shape_cast %0 : vector<1x1x64x32xbf16> to vector<64x32xbf16>
    %c0_3 = arith.constant 0 : index
    %c0_4 = arith.constant 0 : index
    %c0_5 = arith.constant 0 : index
    %2 = vector.load %arg4[%c0_3, %c0_4, %c0_5] : memref<1x32x3200xbf16, #tpu.memory_space<vmem>>, vector<1x32x3200xbf16>
    %3 = vector.shape_cast %2 : vector<1x32x3200xbf16> to vector<32x3200xbf16>
    %cst = arith.constant dense<0.000000e+00> : vector<64x3200xf32>
    %4 = tpu.matmul %1, %3, %cst {dimension_numbers = #tpu.dot_dimension_numbers<[1], [0], [0], [1], [0, 0, 1, 1], [], []>} : vector<64x32xbf16>, vector<32x3200xbf16>, vector<64x3200xf32> -> vector<64x3200xf32>
    %c0_6 = arith.constant 0 : index
    %c0_7 = arith.constant 0 : index
    %5 = vector.load %arg2[%c0_6, %c0_7] : memref<64x128xi32, #tpu.memory_space<vmem>>, vector<64x128xi32>
    %cst_8 = arith.constant 0.000000e+00 : f32
    %6 = vector.broadcast %cst_8 : f32 to vector<64x128xf32>
    %c0_i32 = arith.constant 0 : i32
    %7 = vector.broadcast %c0_i32 : i32 to vector<64x128xi32>
    %8 = arith.cmpi eq, %5, %7 : vector<64x128xi32>
    %9 = vector.extract_strided_slice %4 {offsets = [0, 0], sizes = [64, 128], strides = [1, 1]} : vector<64x3200xf32> to vector<64x128xf32>
    %cst_9 = arith.constant 0.000000e+00 : f32
    %10 = vector.broadcast %cst_9 : f32 to vector<64x128xf32>
    %11 = arith.select %8, %9, %10 : vector<64x128xi1>, vector<64x128xf32>
    %12 = arith.addf %6, %11 : vector<64x128xf32>
    %c1_i32 = arith.constant 1 : i32
    %13 = vector.broadcast %c1_i32 : i32 to vector<64x128xi32>
    %14 = arith.cmpi eq, %5, %13 : vector<64x128xi32>
    %15 = vector.extract_strided_slice %4 {offsets = [0, 128], sizes = [64, 128], strides = [1, 1]} : vector<64x3200xf32> to vector<64x128xf32>
    %cst_10 = arith.constant 0.000000e+00 : f32
    %16 = vector.broadcast %cst_10 : f32 to vector<64x128xf32>
    %17 = arith.select %14, %15, %16 : vector<64x128xi1>, vector<64x128xf32>
    %18 = arith.addf %12, %17 : vector<64x128xf32>
    %c2_i32 = arith.constant 2 : i32
    %19 = vector.broadcast %c2_i32 : i32 to vector<64x128xi32>
    %20 = arith.cmpi eq, %5, %19 : vector<64x128xi32>
    %21 = vector.extract_strided_slice %4 {offsets = [0, 256], sizes = [64, 128], strides = [1, 1]} : vector<64x3200xf32> to vector<64x128xf32>
    %cst_11 = arith.constant 0.000000e+00 : f32
    %22 = vector.broadcast %cst_11 : f32 to vector<64x128xf32>
    %23 = arith.select %20, %21, %22 : vector<64x128xi1>, vector<64x128xf32>
    %24 = arith.addf %18, %23 : vector<64x128xf32>
    %c3_i32 = arith.constant 3 : i32
    %25 = vector.broadcast %c3_i32 : i32 to vector<64x128xi32>
    %26 = arith.cmpi eq, %5, %25 : vector<64x128xi32>
    %27 = vector.extract_strided_slice %4 {offsets = [0, 384], sizes = [64, 128], strides = [1, 1]} : vector<64x3200xf32> to vector<64x128xf32>
    %cst_12 = arith.constant 0.000000e+00 : f32
    %28 = vector.broadcast %cst_12 : f32 to vector<64x128xf32>
    %29 = arith.select %26, %27, %28 : vector<64x128xi1>, vector<64x128xf32>
    %30 = arith.addf %24, %29 : vector<64x128xf32>
    %c4_i32 = arith.constant 4 : i32
    %31 = vector.broadcast %c4_i32 : i32 to vector<64x128xi32>
    %32 = arith.cmpi eq, %5, %31 : vector<64x128xi32>
    %33 = vector.extract_strided_slice %4 {offsets = [0, 512], sizes = [64, 128], strides = [1, 1]} : vector<64x3200xf32> to vector<64x128xf32>
    %cst_13 = arith.constant 0.000000e+00 : f32
    %34 = vector.broadcast %cst_13 : f32 to vector<64x128xf32>
    %35 = arith.select %32, %33, %34 : vector<64x128xi1>, vector<64x128xf32>
    %36 = arith.addf %30, %35 : vector<64x128xf32>
    %c5_i32 = arith.constant 5 : i32
    %37 = vector.broadcast %c5_i32 : i32 to vector<64x128xi32>
    %38 = arith.cmpi eq, %5, %37 : vector<64x128xi32>
    %39 = vector.extract_strided_slice %4 {offsets = [0, 640], sizes = [64, 128], strides = [1, 1]} : vector<64x3200xf32> to vector<64x128xf32>
    %cst_14 = arith.constant 0.000000e+00 : f32
    %40 = vector.broadcast %cst_14 : f32 to vector<64x128xf32>
    %41 = arith.select %38, %39, %40 : vector<64x128xi1>, vector<64x128xf32>
    %42 = arith.addf %36, %41 : vector<64x128xf32>
    %c6_i32 = arith.constant 6 : i32
    %43 = vector.broadcast %c6_i32 : i32 to vector<64x128xi32>
    %44 = arith.cmpi eq, %5, %43 : vector<64x128xi32>
    %45 = vector.extract_strided_slice %4 {offsets = [0, 768], sizes = [64, 128], strides = [1, 1]} : vector<64x3200xf32> to vector<64x128xf32>
    %cst_15 = arith.constant 0.000000e+00 : f32
    %46 = vector.broadcast %cst_15 : f32 to vector<64x128xf32>
    %47 = arith.select %44, %45, %46 : vector<64x128xi1>, vector<64x128xf32>
    %48 = arith.addf %42, %47 : vector<64x128xf32>
    %c7_i32 = arith.constant 7 : i32
    %49 = vector.broadcast %c7_i32 : i32 to vector<64x128xi32>
    %50 = arith.cmpi eq, %5, %49 : vector<64x128xi32>
    %51 = vector.extract_strided_slice %4 {offsets = [0, 896], sizes = [64, 128], strides = [1, 1]} : vector<64x3200xf32> to vector<64x128xf32>
    %cst_16 = arith.constant 0.000000e+00 : f32
    %52 = vector.broadcast %cst_16 : f32 to vector<64x128xf32>
    %53 = arith.select %50, %51, %52 : vector<64x128xi1>, vector<64x128xf32>
    %54 = arith.addf %48, %53 : vector<64x128xf32>
    %c8_i32 = arith.constant 8 : i32
    %55 = vector.broadcast %c8_i32 : i32 to vector<64x128xi32>
    %56 = arith.cmpi eq, %5, %55 : vector<64x128xi32>
    %57 = vector.extract_strided_slice %4 {offsets = [0, 1024], sizes = [64, 128], strides = [1, 1]} : vector<64x3200xf32> to vector<64x128xf32>
    %cst_17 = arith.constant 0.000000e+00 : f32
    %58 = vector.broadcast %cst_17 : f32 to vector<64x128xf32>
    %59 = arith.select %56, %57, %58 : vector<64x128xi1>, vector<64x128xf32>
    %60 = arith.addf %54, %59 : vector<64x128xf32>
    %c9_i32 = arith.constant 9 : i32
    %61 = vector.broadcast %c9_i32 : i32 to vector<64x128xi32>
    %62 = arith.cmpi eq, %5, %61 : vector<64x128xi32>
    %63 = vector.extract_strided_slice %4 {offsets = [0, 1152], sizes = [64, 128], strides = [1, 1]} : vector<64x3200xf32> to vector<64x128xf32>
    %cst_18 = arith.constant 0.000000e+00 : f32
    %64 = vector.broadcast %cst_18 : f32 to vector<64x128xf32>
    %65 = arith.select %62, %63, %64 : vector<64x128xi1>, vector<64x128xf32>
    %66 = arith.addf %60, %65 : vector<64x128xf32>
    %c10_i32 = arith.constant 10 : i32
    %67 = vector.broadcast %c10_i32 : i32 to vector<64x128xi32>
    %68 = arith.cmpi eq, %5, %67 : vector<64x128xi32>
    %69 = vector.extract_strided_slice %4 {offsets = [0, 1280], sizes = [64, 128], strides = [1, 1]} : vector<64x3200xf32> to vector<64x128xf32>
    %cst_19 = arith.constant 0.000000e+00 : f32
    %70 = vector.broadcast %cst_19 : f32 to vector<64x128xf32>
    %71 = arith.select %68, %69, %70 : vector<64x128xi1>, vector<64x128xf32>
    %72 = arith.addf %66, %71 : vector<64x128xf32>
    %c11_i32 = arith.constant 11 : i32
    %73 = vector.broadcast %c11_i32 : i32 to vector<64x128xi32>
    %74 = arith.cmpi eq, %5, %73 : vector<64x128xi32>
    %75 = vector.extract_strided_slice %4 {offsets = [0, 1408], sizes = [64, 128], strides = [1, 1]} : vector<64x3200xf32> to vector<64x128xf32>
    %cst_20 = arith.constant 0.000000e+00 : f32
    %76 = vector.broadcast %cst_20 : f32 to vector<64x128xf32>
    %77 = arith.select %74, %75, %76 : vector<64x128xi1>, vector<64x128xf32>
    %78 = arith.addf %72, %77 : vector<64x128xf32>
    %c12_i32 = arith.constant 12 : i32
    %79 = vector.broadcast %c12_i32 : i32 to vector<64x128xi32>
    %80 = arith.cmpi eq, %5, %79 : vector<64x128xi32>
    %81 = vector.extract_strided_slice %4 {offsets = [0, 1536], sizes = [64, 128], strides = [1, 1]} : vector<64x3200xf32> to vector<64x128xf32>
    %cst_21 = arith.constant 0.000000e+00 : f32
    %82 = vector.broadcast %cst_21 : f32 to vector<64x128xf32>
    %83 = arith.select %80, %81, %82 : vector<64x128xi1>, vector<64x128xf32>
    %84 = arith.addf %78, %83 : vector<64x128xf32>
    %c13_i32 = arith.constant 13 : i32
    %85 = vector.broadcast %c13_i32 : i32 to vector<64x128xi32>
    %86 = arith.cmpi eq, %5, %85 : vector<64x128xi32>
    %87 = vector.extract_strided_slice %4 {offsets = [0, 1664], sizes = [64, 128], strides = [1, 1]} : vector<64x3200xf32> to vector<64x128xf32>
    %cst_22 = arith.constant 0.000000e+00 : f32
    %88 = vector.broadcast %cst_22 : f32 to vector<64x128xf32>
    %89 = arith.select %86, %87, %88 : vector<64x128xi1>, vector<64x128xf32>
    %90 = arith.addf %84, %89 : vector<64x128xf32>
    %c14_i32 = arith.constant 14 : i32
    %91 = vector.broadcast %c14_i32 : i32 to vector<64x128xi32>
    %92 = arith.cmpi eq, %5, %91 : vector<64x128xi32>
    %93 = vector.extract_strided_slice %4 {offsets = [0, 1792], sizes = [64, 128], strides = [1, 1]} : vector<64x3200xf32> to vector<64x128xf32>
    %cst_23 = arith.constant 0.000000e+00 : f32
    %94 = vector.broadcast %cst_23 : f32 to vector<64x128xf32>
    %95 = arith.select %92, %93, %94 : vector<64x128xi1>, vector<64x128xf32>
    %96 = arith.addf %90, %95 : vector<64x128xf32>
    %c15_i32 = arith.constant 15 : i32
    %97 = vector.broadcast %c15_i32 : i32 to vector<64x128xi32>
    %98 = arith.cmpi eq, %5, %97 : vector<64x128xi32>
    %99 = vector.extract_strided_slice %4 {offsets = [0, 1920], sizes = [64, 128], strides = [1, 1]} : vector<64x3200xf32> to vector<64x128xf32>
    %cst_24 = arith.constant 0.000000e+00 : f32
    %100 = vector.broadcast %cst_24 : f32 to vector<64x128xf32>
    %101 = arith.select %98, %99, %100 : vector<64x128xi1>, vector<64x128xf32>
    %102 = arith.addf %96, %101 : vector<64x128xf32>
    %c16_i32 = arith.constant 16 : i32
    %103 = vector.broadcast %c16_i32 : i32 to vector<64x128xi32>
    %104 = arith.cmpi eq, %5, %103 : vector<64x128xi32>
    %105 = vector.extract_strided_slice %4 {offsets = [0, 2048], sizes = [64, 128], strides = [1, 1]} : vector<64x3200xf32> to vector<64x128xf32>
    %cst_25 = arith.constant 0.000000e+00 : f32
    %106 = vector.broadcast %cst_25 : f32 to vector<64x128xf32>
    %107 = arith.select %104, %105, %106 : vector<64x128xi1>, vector<64x128xf32>
    %108 = arith.addf %102, %107 : vector<64x128xf32>
    %c17_i32 = arith.constant 17 : i32
    %109 = vector.broadcast %c17_i32 : i32 to vector<64x128xi32>
    %110 = arith.cmpi eq, %5, %109 : vector<64x128xi32>
    %111 = vector.extract_strided_slice %4 {offsets = [0, 2176], sizes = [64, 128], strides = [1, 1]} : vector<64x3200xf32> to vector<64x128xf32>
    %cst_26 = arith.constant 0.000000e+00 : f32
    %112 = vector.broadcast %cst_26 : f32 to vector<64x128xf32>
    %113 = arith.select %110, %111, %112 : vector<64x128xi1>, vector<64x128xf32>
    %114 = arith.addf %108, %113 : vector<64x128xf32>
    %c18_i32 = arith.constant 18 : i32
    %115 = vector.broadcast %c18_i32 : i32 to vector<64x128xi32>
    %116 = arith.cmpi eq, %5, %115 : vector<64x128xi32>
    %117 = vector.extract_strided_slice %4 {offsets = [0, 2304], sizes = [64, 128], strides = [1, 1]} : vector<64x3200xf32> to vector<64x128xf32>
    %cst_27 = arith.constant 0.000000e+00 : f32
    %118 = vector.broadcast %cst_27 : f32 to vector<64x128xf32>
    %119 = arith.select %116, %117, %118 : vector<64x128xi1>, vector<64x128xf32>
    %120 = arith.addf %114, %119 : vector<64x128xf32>
    %c19_i32 = arith.constant 19 : i32
    %121 = vector.broadcast %c19_i32 : i32 to vector<64x128xi32>
    %122 = arith.cmpi eq, %5, %121 : vector<64x128xi32>
    %123 = vector.extract_strided_slice %4 {offsets = [0, 2432], sizes = [64, 128], strides = [1, 1]} : vector<64x3200xf32> to vector<64x128xf32>
    %cst_28 = arith.constant 0.000000e+00 : f32
    %124 = vector.broadcast %cst_28 : f32 to vector<64x128xf32>
    %125 = arith.select %122, %123, %124 : vector<64x128xi1>, vector<64x128xf32>
    %126 = arith.addf %120, %125 : vector<64x128xf32>
    %c20_i32 = arith.constant 20 : i32
    %127 = vector.broadcast %c20_i32 : i32 to vector<64x128xi32>
    %128 = arith.cmpi eq, %5, %127 : vector<64x128xi32>
    %129 = vector.extract_strided_slice %4 {offsets = [0, 2560], sizes = [64, 128], strides = [1, 1]} : vector<64x3200xf32> to vector<64x128xf32>
    %cst_29 = arith.constant 0.000000e+00 : f32
    %130 = vector.broadcast %cst_29 : f32 to vector<64x128xf32>
    %131 = arith.select %128, %129, %130 : vector<64x128xi1>, vector<64x128xf32>
    %132 = arith.addf %126, %131 : vector<64x128xf32>
    %c21_i32 = arith.constant 21 : i32
    %133 = vector.broadcast %c21_i32 : i32 to vector<64x128xi32>
    %134 = arith.cmpi eq, %5, %133 : vector<64x128xi32>
    %135 = vector.extract_strided_slice %4 {offsets = [0, 2688], sizes = [64, 128], strides = [1, 1]} : vector<64x3200xf32> to vector<64x128xf32>
    %cst_30 = arith.constant 0.000000e+00 : f32
    %136 = vector.broadcast %cst_30 : f32 to vector<64x128xf32>
    %137 = arith.select %134, %135, %136 : vector<64x128xi1>, vector<64x128xf32>
    %138 = arith.addf %132, %137 : vector<64x128xf32>
    %c22_i32 = arith.constant 22 : i32
    %139 = vector.broadcast %c22_i32 : i32 to vector<64x128xi32>
    %140 = arith.cmpi eq, %5, %139 : vector<64x128xi32>
    %141 = vector.extract_strided_slice %4 {offsets = [0, 2816], sizes = [64, 128], strides = [1, 1]} : vector<64x3200xf32> to vector<64x128xf32>
    %cst_31 = arith.constant 0.000000e+00 : f32
    %142 = vector.broadcast %cst_31 : f32 to vector<64x128xf32>
    %143 = arith.select %140, %141, %142 : vector<64x128xi1>, vector<64x128xf32>
    %144 = arith.addf %138, %143 : vector<64x128xf32>
    %c23_i32 = arith.constant 23 : i32
    %145 = vector.broadcast %c23_i32 : i32 to vector<64x128xi32>
    %146 = arith.cmpi eq, %5, %145 : vector<64x128xi32>
    %147 = vector.extract_strided_slice %4 {offsets = [0, 2944], sizes = [64, 128], strides = [1, 1]} : vector<64x3200xf32> to vector<64x128xf32>
    %cst_32 = arith.constant 0.000000e+00 : f32
    %148 = vector.broadcast %cst_32 : f32 to vector<64x128xf32>
    %149 = arith.select %146, %147, %148 : vector<64x128xi1>, vector<64x128xf32>
    %150 = arith.addf %144, %149 : vector<64x128xf32>
    %c24_i32 = arith.constant 24 : i32
    %151 = vector.broadcast %c24_i32 : i32 to vector<64x128xi32>
    %152 = arith.cmpi eq, %5, %151 : vector<64x128xi32>
    %153 = vector.extract_strided_slice %4 {offsets = [0, 3072], sizes = [64, 128], strides = [1, 1]} : vector<64x3200xf32> to vector<64x128xf32>
    %cst_33 = arith.constant 0.000000e+00 : f32
    %154 = vector.broadcast %cst_33 : f32 to vector<64x128xf32>
    %155 = arith.select %152, %153, %154 : vector<64x128xi1>, vector<64x128xf32>
    %156 = arith.addf %150, %155 : vector<64x128xf32>
    %c0_34 = arith.constant 0 : index
    %c0_35 = arith.constant 0 : index
    %c0_36 = arith.constant 0 : index
    %c0_37 = arith.constant 0 : index
    %157 = vector.load %arg5[%c0_34, %c0_35, %c0_36, %c0_37] : memref<1x1x64x128xf32, #tpu.memory_space<vmem>>, vector<1x1x64x128xf32>
    %158 = vector.shape_cast %157 : vector<1x1x64x128xf32> to vector<64x128xf32>
    %159 = vector.shape_cast %156 : vector<64x128xf32> to vector<1x1x64x128xf32>
    tpu.vector_store %arg5[%c0_34, %c0_35, %c0_36, %c0_37], %159 {strides = array<i32>} : memref<1x1x64x128xf32, #tpu.memory_space<vmem>>, vector<1x1x64x128xf32>,
    return
  }
  func.func @transform_0(%arg0: i32, %arg1: i32) -> (i32, i32) {
    %c0_i32 = arith.constant 0 : i32
    %c0_i32_0 = arith.constant 0 : i32
    %c0_i32_1 = arith.constant 0 : i32
    return %c0_i32, %c0_i32_0 : i32, i32
  }
  func.func @transform_1(%arg0: i32, %arg1: i32) -> (i32, i32, i32, i32) {
    %c0_i32 = arith.constant 0 : i32
    %c0_i32_0 = arith.constant 0 : i32
    %c0_i32_1 = arith.constant 0 : i32
    return %arg1, %arg0, %c0_i32, %c0_i32_0 : i32, i32, i32, i32
  }
  func.func @transform_2(%arg0: i32, %arg1: i32) -> (i32, i32, i32) {
    %c0_i32 = arith.constant 0 : i32
    %c0_i32_0 = arith.constant 0 : i32
    %c0_i32_1 = arith.constant 0 : i32
    return %arg0, %c0_i32, %c0_i32_0 : i32, i32, i32
  }
  func.func @transform_3(%arg0: i32, %arg1: i32) -> (i32, i32, i32, i32) {
    %c0_i32 = arith.constant 0 : i32
    %c0_i32_0 = arith.constant 0 : i32
    %c0_i32_1 = arith.constant 0 : i32
    return %arg1, %arg0, %c0_i32, %c0_i32_0 : i32, i32, i32, i32
  }
}

</mosaic_0001>

<bundles_post_ra>
// kernel: rpe2d_forward.1
= control target key start
LH: loop header
LB: loop body
LE: loop exit
PB: predicated region body
PF: predicated region fallthrough
CT: control target
= control target key end

     0   :  { %8 = vsyncpa [#allocation3], 0  ;;  %s3725_s0 = inlined_call_operand.vmem [shape: s32[64,128], index: 0, kind: input, shape index: {}]   ;;  %s3726_s1 = inlined_call_operand.vmem [shape: bf16[2,4,64,32], index: 1, kind: input, shape index: {}]   ;;  %s3727_s2 = inlined_call_operand.vmem [shape: bf16[4,32,3200], index: 2, kind: input, shape index: {}]   ;;  %s3728_s3 = inlined_call_operand.hbm [shape: f32[2,4,64,128], index: 3, kind: output, shape index: {}]  }
   0x1   :  { %10 = vsyncpa [#allocation3 + $0x1], 0  ;;  %s2656_s12 = smov 0   ;;  %s2658_s13 = smov 0  }
   0x2   :  { %s2660_s14 = smov 0   ;;  %s2662_s15 = smov 0  }
   0x3   :  { %s2664_s16 = smov 0   ;;  %s2666_s17 = smov 0  }
   0x4   :  { %s2668_s18 = smov 0   ;;  %s2670_s19 = smov 0  }
   0x5 LB: > { %s2233_s20 = sadd.s32 4294967295, %s2630_s19   ;;  %s2234_s21 = sadd.s32 4294967294, %s2630_s19   ;;  %s2630_s19 = sphi %s2670_s19, %s16_s19   ;;  %s2626_s18 = sphi %s2668_s18, %s3780_s18   ;;  %s2622_s17 = sphi %s2666_s17, %s3779_s17   ;;  %s2618_s16 = sphi %s2664_s16, %s3778_s16   ;;  %s2614_s15 = sphi %s2662_s15, %s3777_s15   ;;  %s2610_s14 = sphi %s2660_s14, %s3776_s14   ;;  %s2606_s13 = sphi %s2658_s13, %s3775_s13   ;;  %s2602_s12 = sphi %s2656_s12, %s3774_s12  }
   0x6   : > { %s25_s22 = sadd.s32 1, %s2622_s17  ;;  %s28_s23 = sadd.s32 1, %s2626_s18 }
   0x7   : > { %p26_p0 = scmp.ge.s32.totalorder %s25_s22, 2  ;;  %p122_p1 = scmp.ne.s32.totalorder %s2610_s14, %s2606_s13 }
   0x8   : > { %p123_p2 = scmp.eq.s32.totalorder %s2233_s20, 7  ;;  %p128_p5 = scmp.ne.s32.totalorder %s2606_s13, %s2602_s12 }
   0x9   : > { %s3782_s22 = smov (%p26_p0, %s25_s22), 0  ;;  %s3784_s23 = smov (!%p26_p0, %s28_s23), %s2626_s18 }
   0xa   : > { %s107_s24 = ssub.s32 %s2622_s17, %s3782_s22  ;;  %p2707_p3 = por %p123_p2, %p122_p1 }
   0xb   : > { %p30_p4 = scmp.ge.s32.totalorder %s3784_s23, 4  ;;  %p129_p6 = scmp.eq.s32.totalorder %s2234_s21, 7 }
   0xc   : > { %p2237_p7 = scmp.ge.s32.totalorder %s2630_s19, 1  ;;  %p170_p9 = scmp.lt.s32.totalorder %s2630_s19, 9 }
   0xd   : > { %s3786_s23 = smov (%p30_p4, %s3784_s23), 0  ;;  %p2716_p8 = por %p129_p6, %p128_p5 }
   0xe   : > { %s108_s27 = ssub.s32 %s2626_s18, %s3786_s23  ;;  %s112_s28 = sadd.s32 1, %s2610_s14 }
   0xf   : > { %s109_s29 = sor.u32 %s108_s27, %s107_s24  ;;  %p171_p10 = pnand %p2237_p7, %p170_p9 }
  0x10   : > { %p110_p11 = scmp.eq.s32.totalorder %s109_s29, 0 }
  0x11   : > { %174 = sbr.rel (%p171_p10) target bundleno = 460 (0x1cc), region = 32 }
  0x12   : > { %s2725_s30 = scalar_select %p110_p11, %s2610_s14, %s112_s28  }
  0x16   : > { %p205_p12 = scmp.lt.s32.totalorder %s2618_s16, 3  ;;  %p203_p13 = scmp.lt.s32.totalorder %s2614_s15, 1  ;;  %v2632_v0 = vmov 0   ;;  %vm550_vm0 = vcmask 261120   ;;  %v2954_v55 = vld [vmem:[%s3725_s0] sm:$0xff]  ;;  %v2959_v56 = vld [vmem:[%s3725_s0 + $0x30] sm:$0xff] }
  0x17   : > { %595 = vmatprep.mubr.bf16.mxu0 %v2632_v0  ;;  %625 = vmatprep.mubr.bf16.mxu1 %v2632_v0  ;;  %vm1512_vm1 = vcmp.eq.s32.totalorder %v2954_v55, 0  ;;  %v2965_v57 = vld [vmem:[%s3725_s0 + $0x8] sm:$0xff]  ;;  %vm1518_vm2 = vcmp.eq.s32.totalorder %v2959_v56, 0  ;;  %vm1536_vm3 = vcmp.eq.s32.totalorder %v2954_v55, 1  ;;  %vm1542_vm4 = vcmp.eq.s32.totalorder %v2959_v56, 1  ;;  %v2977_v60 = vld [vmem:[%s3725_s0 + $0x38] sm:$0xff] }
  0x18   : > { %s206_s4 = scalar_select %p205_p12, %s2618_s16, 3  ;;  %vm1513_vm5 = vcmp.eq.s32.totalorder %v2965_v57, 0  ;;  %vm1519_vm6 = vcmp.eq.s32.totalorder %v2977_v60, 0  ;;  %vm1537_vm7 = vcmp.eq.s32.totalorder %v2965_v57, 1  ;;  %vm1543_vm8 = vcmp.eq.s32.totalorder %v2977_v60, 1 }
  0x19   : > { %s204_s5 = scalar_select %p203_p13, %s2614_s15, 1  ;;  %vm1560_vm10 = vcmp.eq.s32.totalorder %v2954_v55, 2  ;;  %vm1584_vm12 = vcmp.eq.s32.totalorder %v2954_v55, 3  ;;  %vm1561_vm13 = vcmp.eq.s32.totalorder %v2965_v57, 2 }
  0x1a   : > { %s2377_s6 = smul.u32 400, %s206_s4  ;;  %s2239_s7 = sshll.u32 %s206_s4, 3 }
  0x1b   : > { %s2240_s8 = sshll.u32 %s204_s5, 5  ;;  %s2350_s10 = sshll.u32 %s2618_s16, 3 }
  0x1c   : > { %s2736_s11 = scalar_lea.vmem %s3727_s2, %s2377_s6  ;;  %s209_s20 = sadd.s32 %s2240_s8, %s2239_s7 }
  0x1d   : > { %v2452_v1 = vld [vmem:[%s2736_s11 + $0xcc] ss:$100 sps:$4 sm:$0xff]   ;;  %s2241_s21 = sshll.u32 %s209_s20, 2  ;;  %v2455_v3 = vld [vmem:[%s2736_s11 + $0x4] ss:$100 sps:$4 sm:$0xff]   ;;  %s200_s7 = sand.u32 1, %s2606_s13  }
  0x1e   : > { %v2454_v2 = vld [vmem:[%s2736_s11 + $0xc8] ss:$100 sps:$4 sm:$0xff]   ;;  %s2743_s28 = scalar_lea.vmem %s3726_s1, %s2241_s21  ;;  %575 = vmatprep.subr.bf16.mxu0 %v2452_v1  ;;  %2373 = vmatprep.subr.bf16.mxu1 %v2452_v1  ;;  %v2457_v4 = vld [vmem:[%s2736_s11] ss:$100 sps:$4 sm:$0xff]   ;;  %v2460_v7 = vld [vmem:[%s2736_s11 + $0xd0] ss:$100 sps:$4 sm:$0xff]  }
  0x1f   : > { %576 = vmatpush1.bf16.msra.mxu0 %v2454_v2  ;;  %2375 = vmatpush1.bf16.msra.mxu1 %v2454_v2  ;;  %v2748_v5 = vld [vmem:[%s2743_s28] sm:$0xff]   ;;  %v2751_v6 = vld [vmem:[%s2743_s28 + $0x18] sm:$0xff]   ;;  %v2468_v11 = vld [vmem:[%s2736_s11 + $0xc] ss:$100 sps:$4 sm:$0xff]   ;;  %s3581_s8 = sshll.u32 %s200_s7, 6  ;;  %s2633_s4 = smov [#allocation2]  }
  0x20   : > { %577 = vmatprep.subr.bf16.mxu0 %v2455_v3  ;;  %2374 = vmatprep.subr.bf16.mxu1 %v2455_v3  ;;  %v2462_v8 = vld [vmem:[%s2736_s11 + $0xd4] ss:$100 sps:$4 sm:$0xff]   ;;  %v2465_v10 = vld [vmem:[%s2736_s11 + $0xdc] ss:$100 sps:$4 sm:$0xff]   ;;  %v2466_v12 = vld [vmem:[%s2736_s11 + $0x8] ss:$100 sps:$4 sm:$0xff]  }
  0x21   : > { %v2463_v9 = vld [vmem:[%s2736_s11 + $0xd8] ss:$100 sps:$4 sm:$0xff]   ;;  %v2472_v13 = vld [vmem:[%s2736_s11 + $0xe4] ss:$100 sps:$4 sm:$0xff]   ;;  %v2473_v14 = vld [vmem:[%s2736_s11 + $0x10] ss:$100 sps:$4 sm:$0xff]  }
  0x22   : > { %v2475_v15 = vld [vmem:[%s2736_s11 + $0x14] ss:$100 sps:$4 sm:$0xff]   ;;  %v2769_v16 = vld [vmem:[%s2743_s28 + $0x8] sm:$0xff]   ;;  %v2470_v17 = vld [vmem:[%s2736_s11 + $0xe0] ss:$100 sps:$4 sm:$0xff]   ;;  %s3615_s9 = scalar_lea.vmem [#allocation2], %s3581_s8 }
  0x23   : > { %578 = vmatpush1.bf16.msra.mxu0 %v2457_v4  ;;  %2376 = vmatpush1.bf16.msra.mxu1 %v2457_v4  ;;  %v2482_v18 = vld [vmem:[%s2736_s11 + $0xec] ss:$100 sps:$4 sm:$0xff]   ;;  %v2479_v19 = vld [vmem:[%s2736_s11 + $0x1c] ss:$100 sps:$4 sm:$0xff]   ;;  %v2485_v21 = vld [vmem:[%s2736_s11 + $0xf4] ss:$100 sps:$4 sm:$0xff]  }
  0x24   : > { %648 = vmatprep.subr.bf16.mxu1 %v2462_v8  ;;  %721 = vmatprep.subr.bf16.mxu0 %v2465_v10  ;;  %v2477_v20 = vld [vmem:[%s2736_s11 + $0x18] ss:$100 sps:$4 sm:$0xff]   ;;  %v2783_v22 = vld [vmem:[%s2743_s28 + $0x10] sm:$0xff]   ;;  %v2480_v23 = vld [vmem:[%s2736_s11 + $0xe8] ss:$100 sps:$4 sm:$0xff]   ;;  %s2136_s20 = sshll.u32 %s3615_s9, 4  ;;  %s3668_s20 = int_to_ptr.vmem [resolvable:$true] %s2136_s20 }
  0x25   : > { %v2488_v24 = vld [vmem:[%s2736_s11 + $0x24] ss:$100 sps:$4 sm:$0xff]   ;;  %v2494_v26 = vld [vmem:[%s2736_s11 + $0xfc] ss:$100 sps:$4 sm:$0xff]   ;;  %v2483_v27 = vld [vmem:[%s2736_s11 + $0xf0] ss:$100 sps:$4 sm:$0xff]  }
  0x26   : > { %2297 = vmatmul.mubr.msk.bf16.vlgmr.msra.gmra.mxu0 %vm550_vm0, %v2748_v5  ;;  %2300 = vmatmul.mubr.msk.bf16.vlgmr.msra.gmra.mxu1 %vm550_vm0, %v2751_v6  ;;  %v2486_v25 = vld [vmem:[%s2736_s11 + $0x20] ss:$100 sps:$4 sm:$0xff]   ;;  %v2491_v28 = vld [vmem:[%s2736_s11 + $0x2c] ss:$100 sps:$4 sm:$0xff]   ;;  %v2492_v31 = vld [vmem:[%s2736_s11 + $0xf8] ss:$100 sps:$4 sm:$0xff]  }
  0x27   : > { %649 = vmatpush1.bf16.msra.mxu1 %v2460_v7  ;;  %722 = vmatpush1.bf16.msra.mxu0 %v2463_v9  ;;  %v2489_v29 = vld [vmem:[%s2736_s11 + $0x28] ss:$100 sps:$4 sm:$0xff]   ;;  %v2500_v32 = vld [vmem:[%s2736_s11 + $0x34] ss:$100 sps:$4 sm:$0xff]   ;;  %v2495_v35 = vld [vmem:[%s2736_s11 + $0x100] ss:$100 sps:$4 sm:$0xff]  }
  0x28   : > { %650 = vmatprep.subr.bf16.mxu1 %v2468_v11  ;;  %605 = vmatprep.mubr.bf16.mxu0 %v2632_v0  ;;  %v2497_v30 = vld [vmem:[%s2736_s11 + $0x104] ss:$100 sps:$4 sm:$0xff]   ;;  %v2498_v33 = vld [vmem:[%s2736_s11 + $0x30] ss:$100 sps:$4 sm:$0xff]   ;;  %v2503_v36 = vld [vmem:[%s2736_s11 + $0x3c] ss:$100 sps:$4 sm:$0xff]  }
  0x29   : > { %668 = vmatprep.mubr.bf16.mxu1 %v2632_v0  ;;  %723 = vmatprep.subr.bf16.mxu0 %v2475_v15  ;;  %v2506_v34 = vld [vmem:[%s2736_s11 + $0x10c] ss:$100 sps:$4 sm:$0xff]   ;;  %v2501_v37 = vld [vmem:[%s2736_s11 + $0x38] ss:$100 sps:$4 sm:$0xff]   ;;  %v2512_v40 = vld [vmem:[%s2736_s11 + $0x44] ss:$100 sps:$4 sm:$0xff]  }
  0x2a   : > { %v2509_v38 = vld [vmem:[%s2736_s11 + $0x114] ss:$100 sps:$4 sm:$0xff]   ;;  %v2504_v39 = vld [vmem:[%s2736_s11 + $0x108] ss:$100 sps:$4 sm:$0xff]   ;;  %v2510_v41 = vld [vmem:[%s2736_s11 + $0x40] ss:$100 sps:$4 sm:$0xff]  }
  0x2b   : > { %651 = vmatpush1.bf16.msra.mxu1 %v2466_v12  ;;  %724 = vmatpush1.bf16.msra.mxu0 %v2473_v14  ;;  %v2518_v42 = vld [vmem:[%s2736_s11 + $0x11c] ss:$100 sps:$4 sm:$0xff]   ;;  %v2507_v43 = vld [vmem:[%s2736_s11 + $0x110] ss:$100 sps:$4 sm:$0xff]   ;;  %v2513_v45 = vld [vmem:[%s2736_s11 + $0x48] ss:$100 sps:$4 sm:$0xff]  }
  0x2c   : > { %794 = vmatprep.subr.bf16.mxu1 %v2472_v13  ;;  %867 = vmatprep.subr.bf16.mxu0 %v2482_v18  ;;  %v2515_v44 = vld [vmem:[%s2736_s11 + $0x4c] ss:$100 sps:$4 sm:$0xff]   ;;  %v2521_v46 = vld [vmem:[%s2736_s11 + $0x124] ss:$100 sps:$4 sm:$0xff]   ;;  %v2516_v47 = vld [vmem:[%s2736_s11 + $0x118] ss:$100 sps:$4 sm:$0xff]  }
  0x2d   : > { %v2524_v48 = vld [vmem:[%s2736_s11 + $0x54] ss:$100 sps:$4 sm:$0xff]   ;;  %v2528_v50 = vld [vmem:[%s2736_s11 + $0x128] ss:$100 sps:$4 sm:$0xff]   ;;  %v2519_v51 = vld [vmem:[%s2736_s11 + $0x120] ss:$100 sps:$4 sm:$0xff]  }
  0x2e   : > { %2298 = vmatmul.mubr.msk.bf16.gmra.mxu0 %vm550_vm0, %v2769_v16  ;;  %2301 = vmatmul.mubr.msk.bf16.vlgmr.msra.gmra.mxu1 %vm550_vm0, %v2748_v5  ;;  %v2522_v49 = vld [vmem:[%s2736_s11 + $0x50] ss:$100 sps:$4 sm:$0xff]   ;;  %v2527_v52 = vld [vmem:[%s2736_s11 + $0x5c] ss:$100 sps:$4 sm:$0xff]   ;;  %s3674_s28 = scalar_lea.sflag [#allocation3], %s200_s7  ;;  %s2538_s29 = scalar_lea.vmem %s3668_s20, 1024 }
  0x2f   : > { %795 = vmatpush1.bf16.msra.mxu1 %v2470_v17  ;;  %615 = vmatprep.mubr.bf16.mxu0 %v2632_v0  ;;  %v2525_v53 = vld [vmem:[%s2736_s11 + $0x58] ss:$100 sps:$4 sm:$0xff]   ;;  %v2529_v54 = vld [vmem:[%s2736_s11 + $0x60] ss:$100 sps:$4 sm:$0xff]   ;;  %v2984_v3 = vld [vmem:[%s3725_s0 + $0x10] sm:$0xff]  ;;  %s2351_s11 = sshll.u32 %s2614_s15, 5  ;;  %p2539_p0 = scmp.ne.s32.totalorder %s3668_s20, %s2538_s29 }
  0x30   : > { %678 = vmatprep.mubr.bf16.mxu1 %v2632_v0  ;;  %796 = vmatprep.subr.bf16.mxu1 %v2479_v19  ;;  %vm1514_vm9 = vcmp.eq.s32.totalorder %v2984_v3, 0  ;;  %vm1538_vm11 = vcmp.eq.s32.totalorder %v2984_v3, 1  ;;  %v3001_v18 = vld [vmem:[%s3725_s0 + $0x18] sm:$0xff]  ;;  %s2133_s15 = sadd.s32 %s2351_s11, %s2350_s10  ;;  %s2542_s5 = sshll.u32 %s2633_s4, 4  ;;  %s2543_s5 = int_to_ptr.vmem [resolvable:$false] %s2542_s5 }
  0x31   : > { %vm1515_vm14 = vcmp.eq.s32.totalorder %v3001_v18, 0  ;;  %vm1539_vm15 = vcmp.eq.s32.totalorder %v3001_v18, 1  ;;  %s2352_s16 = sshll.u32 %s2133_s15, 7  ;;  %p2540_p1 = pnand %p2539_p0, %p2707_p3 }
  0x32   : > { %s3666_s27 = scalar_lea.hbm %s3728_s3, %s2352_s16  ;;  %s2544_s6 = scalar_lea.vmem %s2543_s5, 2048 }
  0x33   : > { %797 = vmatpush1.bf16.msra.mxu1 %v2477_v20  ;;  %p2541_p2 = pneg %p2540_p1  ;;  %p2545_p4 = scmp.lt.s32.totalorder %s3668_s20, %s2543_s5 }
  0x34   : > { %940 = vmatprep.subr.bf16.mxu1 %v2485_v21  ;;  %p2546_p5 = scmp.lt.s32.totalorder %s2544_s6, %s2538_s29 }
  0x36   : > { %2299 = vmatmul.mubr.msk.bf16.gmra.mxu0 %vm550_vm0, %v2783_v22  ;;  %2302 = vmatmul.mubr.msk.bf16.gmra.mxu1 %vm550_vm0, %v2769_v16  ;;  %p2547_p6 = por %p2546_p5, %p2545_p4 }
  0x37   : > { %688 = vmatprep.mubr.bf16.mxu1 %v2632_v0  ;;  %741 = vmatprep.mubr.bf16.mxu0 %v2632_v0 }
  0x38   : > { %p2548_p7 = pnand %p2547_p6, %p2541_p2 }
  0x3e   : > { %2303 = vmatmul.mubr.msk.bf16.gmra.mxu1 %vm550_vm0, %v2783_v22  ;;  %2305 = vmatmul.mubr.msk.bf16.vlgmr.msra.gmra.mxu0 %vm550_vm0, %v2748_v5 }
  0x3f   : > { %868 = vmatpush1.bf16.msra.mxu0 %v2480_v23  ;;  %698 = vmatprep.mubr.bf16.mxu1 %v2632_v0 }
  0x40   : > { %751 = vmatprep.mubr.bf16.mxu0 %v2632_v0  ;;  %869 = vmatprep.subr.bf16.mxu0 %v2488_v24 }
  0x43   : > { %870 = vmatpush1.bf16.msra.mxu0 %v2486_v25 }
  0x44   : > { %1013 = vmatprep.subr.bf16.mxu0 %v2494_v26  ;;  %v3008_v26 = vld [vmem:[%s3725_s0 + $0x20] sm:$0xff] }
  0x46   : > { %2304 = vmatmul.mubr.msk.bf16.gmra.mxu1 %vm550_vm0, %v2751_v6  ;;  %2306 = vmatmul.mubr.msk.bf16.gmra.mxu0 %vm550_vm0, %v2769_v16 }
  0x47   : > { %761 = vmatprep.mubr.bf16.mxu0 %v2632_v0  ;;  %814 = vmatprep.mubr.bf16.mxu1 %v2632_v0 }
  0x4e   : > { %2307 = vmatmul.mubr.msk.bf16.gmra.mxu0 %vm550_vm0, %v2783_v22  ;;  %2309 = vmatmul.mubr.msk.bf16.vlgmr.msra.gmra.mxu1 %vm550_vm0, %v2748_v5 }
  0x4f   : > { %941 = vmatpush1.bf16.msra.mxu1 %v2483_v27  ;;  %771 = vmatprep.mubr.bf16.mxu0 %v2632_v0 }
  0x50   : > { %824 = vmatprep.mubr.bf16.mxu1 %v2632_v0  ;;  %942 = vmatprep.subr.bf16.mxu1 %v2491_v28 }
  0x53   : > { %943 = vmatpush1.bf16.msra.mxu1 %v2489_v29 }
  0x54   : > { %1086 = vmatprep.subr.bf16.mxu1 %v2497_v30 }
  0x56   : > { %2308 = vmatmul.mubr.msk.bf16.gmra.mxu0 %vm550_vm0, %v2751_v6  ;;  %2310 = vmatmul.mubr.msk.bf16.gmra.mxu1 %vm550_vm0, %v2769_v16 }
  0x57   : > { %834 = vmatprep.mubr.bf16.mxu1 %v2632_v0  ;;  %887 = vmatprep.mubr.bf16.mxu0 %v2632_v0 }
  0x5e   : > { %2311 = vmatmul.mubr.msk.bf16.gmra.mxu1 %vm550_vm0, %v2783_v22  ;;  %2313 = vmatmul.mubr.msk.bf16.vlgmr.msra.gmra.mxu0 %vm550_vm0, %v2748_v5 }
  0x5f   : > { %1014 = vmatpush1.bf16.msra.mxu0 %v2492_v31  ;;  %844 = vmatprep.mubr.bf16.mxu1 %v2632_v0 }
  0x60   : > { %897 = vmatprep.mubr.bf16.mxu0 %v2632_v0  ;;  %1015 = vmatprep.subr.bf16.mxu0 %v2500_v32 }
  0x63   : > { %1016 = vmatpush1.bf16.msra.mxu0 %v2498_v33 }
  0x64   : > { %1159 = vmatprep.subr.bf16.mxu0 %v2506_v34 }
  0x66   : > { %2312 = vmatmul.mubr.msk.bf16.gmra.mxu1 %vm550_vm0, %v2751_v6  ;;  %2314 = vmatmul.mubr.msk.bf16.gmra.mxu0 %vm550_vm0, %v2769_v16 }
  0x67   : > { %907 = vmatprep.mubr.bf16.mxu0 %v2632_v0  ;;  %960 = vmatprep.mubr.bf16.mxu1 %v2632_v0 }
  0x6e   : > { %2315 = vmatmul.mubr.msk.bf16.gmra.mxu0 %vm550_vm0, %v2783_v22  ;;  %2317 = vmatmul.mubr.msk.bf16.vlgmr.msra.gmra.mxu1 %vm550_vm0, %v2748_v5 }
  0x6f   : > { %1087 = vmatpush1.bf16.msra.mxu1 %v2495_v35  ;;  %917 = vmatprep.mubr.bf16.mxu0 %v2632_v0 }
  0x70   : > { %970 = vmatprep.mubr.bf16.mxu1 %v2632_v0  ;;  %1088 = vmatprep.subr.bf16.mxu1 %v2503_v36 }
  0x73   : > { %1089 = vmatpush1.bf16.msra.mxu1 %v2501_v37 }
  0x74   : > { %1232 = vmatprep.subr.bf16.mxu1 %v2509_v38 }
  0x76   : > { %2316 = vmatmul.mubr.msk.bf16.gmra.mxu0 %vm550_vm0, %v2751_v6  ;;  %2318 = vmatmul.mubr.msk.bf16.gmra.mxu1 %vm550_vm0, %v2769_v16 }
  0x77   : > { %980 = vmatprep.mubr.bf16.mxu1 %v2632_v0  ;;  %1033 = vmatprep.mubr.bf16.mxu0 %v2632_v0 }
  0x7e   : > { %2319 = vmatmul.mubr.msk.bf16.gmra.mxu1 %vm550_vm0, %v2783_v22  ;;  %2321 = vmatmul.mubr.msk.bf16.vlgmr.msra.gmra.mxu0 %vm550_vm0, %v2748_v5 }
  0x7f   : > { %1160 = vmatpush1.bf16.msra.mxu0 %v2504_v39  ;;  %990 = vmatprep.mubr.bf16.mxu1 %v2632_v0 }
  0x80   : > { %1043 = vmatprep.mubr.bf16.mxu0 %v2632_v0  ;;  %1161 = vmatprep.subr.bf16.mxu0 %v2512_v40 }
  0x83   : > { %1162 = vmatpush1.bf16.msra.mxu0 %v2510_v41 }
  0x84   : > { %1305 = vmatprep.subr.bf16.mxu0 %v2518_v42  ;;  %v3019_v42 = vld [vmem:[%s3725_s0 + $0x28] sm:$0xff] }
  0x86   : > { %2320 = vmatmul.mubr.msk.bf16.gmra.mxu1 %vm550_vm0, %v2751_v6  ;;  %2322 = vmatmul.mubr.msk.bf16.gmra.mxu0 %vm550_vm0, %v2769_v16 }
  0x87   : > { %1053 = vmatprep.mubr.bf16.mxu0 %v2632_v0  ;;  %1106 = vmatprep.mubr.bf16.mxu1 %v2632_v0 }
  0x8e   : > { %2323 = vmatmul.mubr.msk.bf16.gmra.mxu0 %vm550_vm0, %v2783_v22  ;;  %2325 = vmatmul.mubr.msk.bf16.vlgmr.msra.gmra.mxu1 %vm550_vm0, %v2748_v5 }
  0x8f   : > { %1233 = vmatpush1.bf16.msra.mxu1 %v2507_v43  ;;  %1063 = vmatprep.mubr.bf16.mxu0 %v2632_v0 }
  0x90   : > { %1116 = vmatprep.mubr.bf16.mxu1 %v2632_v0  ;;  %1234 = vmatprep.subr.bf16.mxu1 %v2515_v44 }
  0x93   : > { %1235 = vmatpush1.bf16.msra.mxu1 %v2513_v45 }
  0x94   : > { %1378 = vmatprep.subr.bf16.mxu1 %v2521_v46 }
  0x96   : > { %2324 = vmatmul.mubr.msk.bf16.gmra.mxu0 %vm550_vm0, %v2751_v6  ;;  %2326 = vmatmul.mubr.msk.bf16.gmra.mxu1 %vm550_vm0, %v2769_v16 }
  0x97   : > { %1126 = vmatprep.mubr.bf16.mxu1 %v2632_v0  ;;  %1179 = vmatprep.mubr.bf16.mxu0 %v2632_v0 }
  0x9e   : > { %2327 = vmatmul.mubr.msk.bf16.gmra.mxu1 %vm550_vm0, %v2783_v22  ;;  %2329 = vmatmul.mubr.msk.bf16.vlgmr.msra.gmra.mxu0 %vm550_vm0, %v2748_v5 }
  0x9f   : > { %1306 = vmatpush1.bf16.msra.mxu0 %v2516_v47  ;;  %1136 = vmatprep.mubr.bf16.mxu1 %v2632_v0 }
  0xa0   : > { %1189 = vmatprep.mubr.bf16.mxu0 %v2632_v0  ;;  %1307 = vmatprep.subr.bf16.mxu0 %v2524_v48 }
  0xa3   : > { %1308 = vmatpush1.bf16.msra.mxu0 %v2522_v49 }
  0xa4   : > { %2361 = vmatprep.subr.bf16.mxu0 %v2528_v50 }
  0xa6   : > { %2328 = vmatmul.mubr.msk.bf16.gmra.mxu1 %vm550_vm0, %v2751_v6  ;;  %2330 = vmatmul.mubr.msk.bf16.gmra.mxu0 %vm550_vm0, %v2769_v16 }
  0xa7   : > { %1199 = vmatprep.mubr.bf16.mxu0 %v2632_v0  ;;  %1252 = vmatprep.mubr.bf16.mxu1 %v2632_v0 }
  0xae   : > { %2331 = vmatmul.mubr.msk.bf16.gmra.mxu0 %vm550_vm0, %v2783_v22  ;;  %2333 = vmatmul.mubr.msk.bf16.vlgmr.msra.gmra.mxu1 %vm550_vm0, %v2748_v5 }
  0xaf   : > { %1379 = vmatpush1.bf16.msra.mxu1 %v2519_v51  ;;  %1209 = vmatprep.mubr.bf16.mxu0 %v2632_v0 }
  0xb0   : > { %1262 = vmatprep.mubr.bf16.mxu1 %v2632_v0  ;;  %1380 = vmatprep.subr.bf16.mxu1 %v2527_v52 }
  0xb3   : > { %1381 = vmatpush1.bf16.msra.mxu1 %v2525_v53 }
  0xb6   : > { %2332 = vmatmul.mubr.msk.bf16.gmra.mxu0 %vm550_vm0, %v2751_v6  ;;  %2334 = vmatmul.mubr.msk.bf16.gmra.mxu1 %vm550_vm0, %v2769_v16 }
  0xb7   : > { %1272 = vmatprep.mubr.bf16.mxu1 %v2632_v0  ;;  %1325 = vmatprep.mubr.bf16.mxu0 %v2632_v0 }
  0xbe   : > { %2335 = vmatmul.mubr.msk.bf16.gmra.mxu1 %vm550_vm0, %v2783_v22  ;;  %2337 = vmatmul.mubr.msk.bf16.vlgmr.msra.gmra.mxu0 %vm550_vm0, %v2748_v5 }
  0xbf   : > { %2362 = vmatpush3.bf16.msra.mxu0 %v2528_v50  ;;  %1282 = vmatprep.mubr.bf16.mxu1 %v2632_v0 }
  0xc0   : > { %1335 = vmatprep.mubr.bf16.mxu0 %v2632_v0  ;;  %2363 = vmatprep.subr.bf16.mxu0 %v2529_v54 }
  0xc3   : > { %2364 = vmatpush3.bf16.msra.mxu0 %v2529_v54 }
  0xc6   : > { %2336 = vmatmul.mubr.msk.bf16.gmra.mxu1 %vm550_vm0, %v2751_v6  ;;  %2338 = vmatmul.mubr.msk.bf16.gmra.mxu0 %vm550_vm0, %v2769_v16 }
  0xc7   : > { %1345 = vmatprep.mubr.bf16.mxu0 %v2632_v0  ;;  %1398 = vmatprep.mubr.bf16.mxu1 %v2632_v0 }
  0xce   : > { %2339 = vmatmul.mubr.msk.bf16.gmra.mxu0 %vm550_vm0, %v2783_v22  ;;  %2341 = vmatmul.mubr.msk.bf16.vlgmr.msra.gmra.mxu1 %vm550_vm0, %v2748_v5 }
  0xcf   : > { %1355 = vmatprep.mubr.bf16.mxu0 %v2632_v0  ;;  %1408 = vmatprep.mubr.bf16.mxu1 %v2632_v0 }
  0xd6   : > { %2340 = vmatmul.mubr.msk.bf16.gmra.mxu0 %vm550_vm0, %v2751_v6  ;;  %2342 = vmatmul.mubr.msk.bf16.gmra.mxu1 %vm550_vm0, %v2769_v16 }
  0xd7   : > { %1418 = vmatprep.mubr.bf16.mxu1 %v2632_v0  ;;  %2365 = vmatprep.mubr.msk.bf16.mxu0 %vm550_vm0, %v2748_v5 }
  0xde   : > { %2343 = vmatmul.mubr.msk.bf16.gmra.mxu1 %vm550_vm0, %v2783_v22  ;;  %2366 = vmatmul.mubr.msk.bf16.vlgmr.msra.gmra.mxu0 %vm550_vm0, %v2769_v16 }
  0xdf   : > { %1428 = vmatprep.mubr.bf16.mxu1 %v2632_v0  ;;  %2369 = vmatprep.mubr.msk.bf16.mxu0 %vm550_vm0, %v2783_v22 }
  0xe6   : > { %v597_v58 = vpop.f32.mrf.mxu0  ;;  %v627_v59 = vpop.f32.mrf.mxu1  ;;  %2344 = vmatmul.mubr.msk.bf16.gmra.mxu1 %vm550_vm0, %v2751_v6  ;;  %2370 = vmatmul.mubr.msk.bf16.gmra.mxu0 %vm550_vm0, %v2751_v6  ;;  %vm1585_vm0 = vcmp.eq.s32.totalorder %v2965_v57, 3 }
  0xe7   : > { %v1520_v61 = vsel %vm1512_vm1, %v597_v58, 0.0  ;;  %v1526_v0 = vsel %vm1518_vm2, %v627_v59, 0.0  ;;  %vm1516_vm1 = vcmp.eq.s32.totalorder %v3008_v26, 0  ;;  %vm1562_vm2 = vcmp.eq.s32.totalorder %v2984_v3, 2 }
  0xe8   : > { %v599_v62 = vpop.f32.mrf.mxu0  ;;  %v629_v63 = vpop.f32.mrf.mxu1 }
  0xe9   : > { %v1544_v1 = vsel %vm1536_vm3, %v599_v62, 0.0  ;;  %v1550_v2 = vsel %vm1542_vm4, %v629_v63, 0.0  ;;  %vm1540_vm3 = vcmp.eq.s32.totalorder %v3008_v26, 1  ;;  %vm1586_vm4 = vcmp.eq.s32.totalorder %v2984_v3, 3 }
  0xea   : > { %v1552_v4 = vadd.f32 %v1544_v1, %v1520_v61  ;;  %v2986_v5 = vadd.f32 %v1550_v2, %v1526_v0  ;;  %v601_v6 = vpop.f32.mrf.mxu0  ;;  %v631_v7 = vpop.f32.mrf.mxu1 }
  0xeb   : > { %v1521_v10 = vsel %vm1513_vm5, %v601_v6, 0.0  ;;  %v1527_v11 = vsel %vm1519_vm6, %v631_v7, 0.0  ;;  %vm1563_vm5 = vcmp.eq.s32.totalorder %v3001_v18, 2  ;;  %vm1517_vm6 = vcmp.eq.s32.totalorder %v3019_v42, 0 }
  0xec   : > { %v603_v8 = vpop.f32.mrf.mxu0  ;;  %v633_v9 = vpop.f32.mrf.mxu1 }
  0xed   : > { %v1545_v12 = vsel %vm1537_vm7, %v603_v8, 0.0  ;;  %v1551_v13 = vsel %vm1543_vm8, %v633_v9, 0.0  ;;  %vm1541_vm7 = vcmp.eq.s32.totalorder %v3019_v42, 1  ;;  %vm1587_vm8 = vcmp.eq.s32.totalorder %v3001_v18, 3 }
  0xee   : > { %v1553_v14 = vadd.f32 %v1545_v12, %v1521_v10  ;;  %v2994_v15 = vadd.f32 %v1551_v13, %v1527_v11  ;;  %v607_v16 = vpop.f32.mrf.mxu0  ;;  %v670_v17 = vpop.f32.mrf.mxu1 }
  0xef   : > { %v1522_v19 = vsel %vm1514_vm9, %v607_v16, 0.0  ;;  %v1568_v20 = vsel %vm1560_vm10, %v670_v17, 0.0  ;;  %vm1564_vm9 = vcmp.eq.s32.totalorder %v3008_v26, 2  ;;  %vm1608_vm10 = vcmp.eq.s32.totalorder %v2954_v55, 4 }
  0xf0   : > { %v1576_v21 = vadd.f32 %v1568_v20, %v1552_v4  ;;  %v609_v22 = vpop.f32.mrf.mxu0  ;;  %v672_v23 = vpop.f32.mrf.mxu1 }
  0xf1   : > { %v1546_v24 = vsel %vm1538_vm11, %v609_v22, 0.0  ;;  %v1592_v25 = vsel %vm1584_vm12, %v672_v23, 0.0  ;;  %vm1588_vm11 = vcmp.eq.s32.totalorder %v3008_v26, 3  ;;  %vm1632_vm12 = vcmp.eq.s32.totalorder %v2954_v55, 5 }
  0xf2   : > { %v1554_v27 = vadd.f32 %v1546_v24, %v1522_v19  ;;  %v1600_v28 = vadd.f32 %v1592_v25, %v1576_v21  ;;  %v611_v29 = vpop.f32.mrf.mxu0  ;;  %v674_v30 = vpop.f32.mrf.mxu1 }
  0xf3   : > { %v1569_v31 = vsel %vm1561_vm13, %v674_v30, 0.0  ;;  %v1523_v35 = vsel %vm1515_vm14, %v611_v29, 0.0  ;;  %vm1565_vm13 = vcmp.eq.s32.totalorder %v3019_v42, 2  ;;  %vm1609_vm14 = vcmp.eq.s32.totalorder %v2965_v57, 4 }
  0xf4   : > { %v1577_v32 = vadd.f32 %v1569_v31, %v1553_v14  ;;  %v613_v33 = vpop.f32.mrf.mxu0  ;;  %v676_v34 = vpop.f32.mrf.mxu1 }
  0xf5   : > { %v1547_v36 = vsel %vm1539_vm15, %v613_v33, 0.0  ;;  %v1593_v37 = vsel %vm1585_vm0, %v676_v34, 0.0  ;;  %vm1589_vm15 = vcmp.eq.s32.totalorder %v3019_v42, 3  ;;  %vm1633_vm0 = vcmp.eq.s32.totalorder %v2965_v57, 5 }
  0xf6   : > { %v1555_v38 = vadd.f32 %v1547_v36, %v1523_v35  ;;  %v1601_v39 = vadd.f32 %v1593_v37, %v1577_v32  ;;  %v617_v40 = vpop.f32.mrf.mxu0  ;;  %v680_v41 = vpop.f32.mrf.mxu1 }
  0xf7   : > { %v1524_v43 = vsel %vm1516_vm1, %v617_v40, 0.0  ;;  %v1570_v44 = vsel %vm1562_vm2, %v680_v41, 0.0  ;;  %vm1566_vm1 = vcmp.eq.s32.totalorder %v2959_v56, 2  ;;  %vm1610_vm2 = vcmp.eq.s32.totalorder %v2984_v3, 4 }
  0xf8   : > { %v1578_v45 = vadd.f32 %v1570_v44, %v1554_v27  ;;  %v619_v46 = vpop.f32.mrf.mxu0  ;;  %v682_v47 = vpop.f32.mrf.mxu1 }
  0xf9   : > { %v1548_v48 = vsel %vm1540_vm3, %v619_v46, 0.0  ;;  %v1594_v49 = vsel %vm1586_vm4, %v682_v47, 0.0  ;;  %vm1590_vm3 = vcmp.eq.s32.totalorder %v2959_v56, 3  ;;  %vm1634_vm4 = vcmp.eq.s32.totalorder %v2984_v3, 5 }
  0xfa   : > { %v1556_v50 = vadd.f32 %v1548_v48, %v1524_v43  ;;  %v1602_v51 = vadd.f32 %v1594_v49, %v1578_v45  ;;  %v621_v52 = vpop.f32.mrf.mxu0  ;;  %v684_v53 = vpop.f32.mrf.mxu1 }
  0xfb   : > { %v1571_v54 = vsel %vm1563_vm5, %v684_v53, 0.0  ;;  %v1525_v62 = vsel %vm1517_vm6, %v621_v52, 0.0  ;;  %vm1567_vm5 = vcmp.eq.s32.totalorder %v2977_v60, 2  ;;  %vm1611_vm6 = vcmp.eq.s32.totalorder %v3001_v18, 4 }
  0xfc   : > { %v1579_v58 = vadd.f32 %v1571_v54, %v1555_v38  ;;  %v623_v59 = vpop.f32.mrf.mxu0  ;;  %v686_v61 = vpop.f32.mrf.mxu1 }
  0xfd   : > { %v1549_v63 = vsel %vm1541_vm7, %v623_v59, 0.0  ;;  %v1595_v0 = vsel %vm1587_vm8, %v686_v61, 0.0  ;;  %vm1591_vm7 = vcmp.eq.s32.totalorder %v2977_v60, 3  ;;  %vm1635_vm8 = vcmp.eq.s32.totalorder %v3001_v18, 5 }
  0xfe   : > { %v1557_v1 = vadd.f32 %v1549_v63, %v1525_v62  ;;  %v1603_v2 = vadd.f32 %v1595_v0, %v1579_v58  ;;  %v690_v4 = vpop.f32.mrf.mxu1  ;;  %v743_v6 = vpop.f32.mrf.mxu0 }
  0xff   : > { %v1572_v7 = vsel %vm1564_vm9, %v690_v4, 0.0  ;;  %v1616_v8 = vsel %vm1608_vm10, %v743_v6, 0.0  ;;  %vm1612_vm9 = vcmp.eq.s32.totalorder %v3008_v26, 4  ;;  %vm1656_vm10 = vcmp.eq.s32.totalorder %v2954_v55, 6 }
 0x100   : > { %v1580_v9 = vadd.f32 %v1572_v7, %v1556_v50  ;;  %v1624_v10 = vadd.f32 %v1616_v8, %v1600_v28  ;;  %v692_v11 = vpop.f32.mrf.mxu1  ;;  %v745_v12 = vpop.f32.mrf.mxu0 }
 0x101   : > { %v1596_v13 = vsel %vm1588_vm11, %v692_v11, 0.0  ;;  %v1640_v14 = vsel %vm1632_vm12, %v745_v12, 0.0  ;;  %vm1636_vm11 = vcmp.eq.s32.totalorder %v3008_v26, 5  ;;  %vm1680_vm12 = vcmp.eq.s32.totalorder %v2954_v55, 7 }
 0x102   : > { %v1604_v16 = vadd.f32 %v1596_v13, %v1580_v9  ;;  %v1648_v17 = vadd.f32 %v1640_v14, %v1624_v10  ;;  %v694_v19 = vpop.f32.mrf.mxu1  ;;  %v747_v20 = vpop.f32.mrf.mxu0 }
 0x103   : > { %v1573_v21 = vsel %vm1565_vm13, %v694_v19, 0.0  ;;  %v1617_v22 = vsel %vm1609_vm14, %v747_v20, 0.0  ;;  %vm1613_vm13 = vcmp.eq.s32.totalorder %v3019_v42, 4  ;;  %vm1657_vm14 = vcmp.eq.s32.totalorder %v2965_v57, 6 }
 0x104   : > { %v1581_v23 = vadd.f32 %v1573_v21, %v1557_v1  ;;  %v1625_v24 = vadd.f32 %v1617_v22, %v1601_v39  ;;  %v696_v25 = vpop.f32.mrf.mxu1  ;;  %v749_v27 = vpop.f32.mrf.mxu0 }
 0x105   : > { %v1597_v28 = vsel %vm1589_vm15, %v696_v25, 0.0  ;;  %v1641_v29 = vsel %vm1633_vm0, %v749_v27, 0.0  ;;  %vm1637_vm15 = vcmp.eq.s32.totalorder %v3019_v42, 5  ;;  %vm1681_vm0 = vcmp.eq.s32.totalorder %v2965_v57, 7 }
 0x106   : > { %v1605_v30 = vadd.f32 %v1597_v28, %v1581_v23  ;;  %v1649_v31 = vadd.f32 %v1641_v29, %v1625_v24  ;;  %v700_v32 = vpop.f32.mrf.mxu1  ;;  %v753_v33 = vpop.f32.mrf.mxu0 }
 0x107   : > { %v1574_v34 = vsel %vm1566_vm1, %v700_v32, 0.0  ;;  %v1618_v35 = vsel %vm1610_vm2, %v753_v33, 0.0  ;;  %vm1614_vm1 = vcmp.eq.s32.totalorder %v2959_v56, 4  ;;  %vm1658_vm2 = vcmp.eq.s32.totalorder %v2984_v3, 6 }
 0x108   : > { %v1582_v36 = vadd.f32 %v1574_v34, %v2986_v5  ;;  %v1626_v37 = vadd.f32 %v1618_v35, %v1602_v51  ;;  %v702_v38 = vpop.f32.mrf.mxu1  ;;  %v755_v39 = vpop.f32.mrf.mxu0 }
 0x109   : > { %v1598_v40 = vsel %vm1590_vm3, %v702_v38, 0.0  ;;  %v1642_v41 = vsel %vm1634_vm4, %v755_v39, 0.0  ;;  %vm1638_vm3 = vcmp.eq.s32.totalorder %v2959_v56, 5  ;;  %vm1682_vm4 = vcmp.eq.s32.totalorder %v2984_v3, 7 }
 0x10a   : > { %v1606_v43 = vadd.f32 %v1598_v40, %v1582_v36  ;;  %v1650_v44 = vadd.f32 %v1642_v41, %v1626_v37  ;;  %v704_v45 = vpop.f32.mrf.mxu1  ;;  %v757_v46 = vpop.f32.mrf.mxu0 }
 0x10b   : > { %v1575_v47 = vsel %vm1567_vm5, %v704_v45, 0.0  ;;  %v1619_v48 = vsel %vm1611_vm6, %v757_v46, 0.0  ;;  %vm1615_vm5 = vcmp.eq.s32.totalorder %v2977_v60, 4  ;;  %vm1659_vm6 = vcmp.eq.s32.totalorder %v3001_v18, 6 }
 0x10c   : > { %v1583_v5 = vadd.f32 %v1575_v47, %v2994_v15  ;;  %v1627_v49 = vadd.f32 %v1619_v48, %v1603_v2  ;;  %v706_v50 = vpop.f32.mrf.mxu1  ;;  %v759_v51 = vpop.f32.mrf.mxu0 }
 0x10d   : > { %v1599_v52 = vsel %vm1591_vm7, %v706_v50, 0.0  ;;  %v1643_v53 = vsel %vm1635_vm8, %v759_v51, 0.0  ;;  %vm1639_vm7 = vcmp.eq.s32.totalorder %v2977_v60, 5  ;;  %vm1683_vm8 = vcmp.eq.s32.totalorder %v3001_v18, 7 }
 0x10e   : > { %v1607_v54 = vadd.f32 %v1599_v52, %v1583_v5  ;;  %v1651_v58 = vadd.f32 %v1643_v53, %v1627_v49  ;;  %v763_v59 = vpop.f32.mrf.mxu0  ;;  %v816_v61 = vpop.f32.mrf.mxu1 }
 0x10f   : > { %v1620_v62 = vsel %vm1612_vm9, %v763_v59, 0.0  ;;  %v1664_v63 = vsel %vm1656_vm10, %v816_v61, 0.0  ;;  %vm1660_vm9 = vcmp.eq.s32.totalorder %v3008_v26, 6  ;;  %vm1704_vm10 = vcmp.eq.s32.totalorder %v2954_v55, 8 }
 0x110   : > { %v1628_v15 = vadd.f32 %v1620_v62, %v1604_v16  ;;  %v1672_v0 = vadd.f32 %v1664_v63, %v1648_v17  ;;  %v765_v1 = vpop.f32.mrf.mxu0  ;;  %v818_v2 = vpop.f32.mrf.mxu1 }
 0x111   : > { %v1644_v4 = vsel %vm1636_vm11, %v765_v1, 0.0  ;;  %v1688_v6 = vsel %vm1680_vm12, %v818_v2, 0.0  ;;  %vm1684_vm11 = vcmp.eq.s32.totalorder %v3008_v26, 7  ;;  %vm1728_vm12 = vcmp.eq.s32.totalorder %v2954_v55, 9 }
 0x112   : > { %v1652_v7 = vadd.f32 %v1644_v4, %v1628_v15  ;;  %v1696_v8 = vadd.f32 %v1688_v6, %v1672_v0  ;;  %v767_v9 = vpop.f32.mrf.mxu0  ;;  %v820_v10 = vpop.f32.mrf.mxu1 }
 0x113   : > { %v1621_v11 = vsel %vm1613_vm13, %v767_v9, 0.0  ;;  %v1665_v12 = vsel %vm1657_vm14, %v820_v10, 0.0  ;;  %vm1661_vm13 = vcmp.eq.s32.totalorder %v3019_v42, 6  ;;  %vm1705_vm14 = vcmp.eq.s32.totalorder %v2965_v57, 8 }
 0x114   : > { %v1629_v13 = vadd.f32 %v1621_v11, %v1605_v30  ;;  %v1673_v14 = vadd.f32 %v1665_v12, %v1649_v31  ;;  %v769_v16 = vpop.f32.mrf.mxu0  ;;  %v822_v17 = vpop.f32.mrf.mxu1 }
 0x115   : > { %v1645_v19 = vsel %vm1637_vm15, %v769_v16, 0.0  ;;  %v1689_v20 = vsel %vm1681_vm0, %v822_v17, 0.0  ;;  %vm1685_vm15 = vcmp.eq.s32.totalorder %v3019_v42, 7  ;;  %vm1729_vm0 = vcmp.eq.s32.totalorder %v2965_v57, 9 }
 0x116   : > { %v1653_v21 = vadd.f32 %v1645_v19, %v1629_v13  ;;  %v1697_v22 = vadd.f32 %v1689_v20, %v1673_v14  ;;  %v773_v23 = vpop.f32.mrf.mxu0  ;;  %v826_v24 = vpop.f32.mrf.mxu1 }
 0x117   : > { %v1622_v25 = vsel %vm1614_vm1, %v773_v23, 0.0  ;;  %v1666_v27 = vsel %vm1658_vm2, %v826_v24, 0.0  ;;  %vm1662_vm1 = vcmp.eq.s32.totalorder %v2959_v56, 6  ;;  %vm1706_vm2 = vcmp.eq.s32.totalorder %v2984_v3, 8 }
 0x118   : > { %v1630_v28 = vadd.f32 %v1622_v25, %v1606_v43  ;;  %v1674_v29 = vadd.f32 %v1666_v27, %v1650_v44  ;;  %v775_v30 = vpop.f32.mrf.mxu0  ;;  %v828_v31 = vpop.f32.mrf.mxu1 }
 0x119   : > { %v1646_v32 = vsel %vm1638_vm3, %v775_v30, 0.0  ;;  %v1690_v33 = vsel %vm1682_vm4, %v828_v31, 0.0  ;;  %vm1686_vm3 = vcmp.eq.s32.totalorder %v2959_v56, 7  ;;  %vm1730_vm4 = vcmp.eq.s32.totalorder %v2984_v3, 9 }
 0x11a   : > { %v1654_v34 = vadd.f32 %v1646_v32, %v1630_v28  ;;  %v1698_v35 = vadd.f32 %v1690_v33, %v1674_v29  ;;  %v777_v36 = vpop.f32.mrf.mxu0  ;;  %v830_v37 = vpop.f32.mrf.mxu1 }
 0x11b   : > { %v1623_v38 = vsel %vm1615_vm5, %v777_v36, 0.0  ;;  %v1667_v39 = vsel %vm1659_vm6, %v830_v37, 0.0  ;;  %vm1663_vm5 = vcmp.eq.s32.totalorder %v2977_v60, 6  ;;  %vm1707_vm6 = vcmp.eq.s32.totalorder %v3001_v18, 8 }
 0x11c   : > { %v1631_v40 = vadd.f32 %v1623_v38, %v1607_v54  ;;  %v1675_v41 = vadd.f32 %v1667_v39, %v1651_v58  ;;  %v779_v43 = vpop.f32.mrf.mxu0  ;;  %v832_v44 = vpop.f32.mrf.mxu1 }
 0x11d   : > { %v1647_v45 = vsel %vm1639_vm7, %v779_v43, 0.0  ;;  %v1691_v46 = vsel %vm1683_vm8, %v832_v44, 0.0  ;;  %vm1687_vm7 = vcmp.eq.s32.totalorder %v2977_v60, 7  ;;  %vm1731_vm8 = vcmp.eq.s32.totalorder %v3001_v18, 9 }
 0x11e   : > { %v1655_v47 = vadd.f32 %v1647_v45, %v1631_v40  ;;  %v1699_v48 = vadd.f32 %v1691_v46, %v1675_v41  ;;  %v836_v5 = vpop.f32.mrf.mxu1  ;;  %v889_v49 = vpop.f32.mrf.mxu0 }
 0x11f   : > { %v1668_v50 = vsel %vm1660_vm9, %v836_v5, 0.0  ;;  %v1712_v51 = vsel %vm1704_vm10, %v889_v49, 0.0  ;;  %vm1708_vm9 = vcmp.eq.s32.totalorder %v3008_v26, 8  ;;  %vm1752_vm10 = vcmp.eq.s32.totalorder %v2954_v55, 10 }
 0x120   : > { %v1676_v52 = vadd.f32 %v1668_v50, %v1652_v7  ;;  %v1720_v53 = vadd.f32 %v1712_v51, %v1696_v8  ;;  %v838_v54 = vpop.f32.mrf.mxu1  ;;  %v891_v58 = vpop.f32.mrf.mxu0 }
 0x121   : > { %v1692_v59 = vsel %vm1684_vm11, %v838_v54, 0.0  ;;  %v1736_v61 = vsel %vm1728_vm12, %v891_v58, 0.0  ;;  %vm1732_vm11 = vcmp.eq.s32.totalorder %v3008_v26, 9  ;;  %vm1776_vm12 = vcmp.eq.s32.totalorder %v2954_v55, 11 }
 0x122   : > { %v1700_v62 = vadd.f32 %v1692_v59, %v1676_v52  ;;  %v1744_v63 = vadd.f32 %v1736_v61, %v1720_v53  ;;  %v840_v15 = vpop.f32.mrf.mxu1  ;;  %v893_v0 = vpop.f32.mrf.mxu0 }
 0x123   : > { %v1669_v1 = vsel %vm1661_vm13, %v840_v15, 0.0  ;;  %v1713_v2 = vsel %vm1705_vm14, %v893_v0, 0.0  ;;  %vm1709_vm13 = vcmp.eq.s32.totalorder %v3019_v42, 8  ;;  %vm1753_vm14 = vcmp.eq.s32.totalorder %v2965_v57, 10 }
 0x124   : > { %v1677_v4 = vadd.f32 %v1669_v1, %v1653_v21  ;;  %v1721_v6 = vadd.f32 %v1713_v2, %v1697_v22  ;;  %v842_v7 = vpop.f32.mrf.mxu1  ;;  %v895_v8 = vpop.f32.mrf.mxu0 }
 0x125   : > { %v1693_v9 = vsel %vm1685_vm15, %v842_v7, 0.0  ;;  %v1737_v10 = vsel %vm1729_vm0, %v895_v8, 0.0  ;;  %vm1733_vm15 = vcmp.eq.s32.totalorder %v3019_v42, 9  ;;  %vm1777_vm0 = vcmp.eq.s32.totalorder %v2965_v57, 11 }
 0x126   : > { %v1701_v11 = vadd.f32 %v1693_v9, %v1677_v4  ;;  %v1745_v12 = vadd.f32 %v1737_v10, %v1721_v6  ;;  %v846_v13 = vpop.f32.mrf.mxu1  ;;  %v899_v14 = vpop.f32.mrf.mxu0 }
 0x127   : > { %v1670_v16 = vsel %vm1662_vm1, %v846_v13, 0.0  ;;  %v1714_v17 = vsel %vm1706_vm2, %v899_v14, 0.0  ;;  %vm1710_vm1 = vcmp.eq.s32.totalorder %v2959_v56, 8  ;;  %vm1754_vm2 = vcmp.eq.s32.totalorder %v2984_v3, 10 }
 0x128   : > { %v1678_v19 = vadd.f32 %v1670_v16, %v1654_v34  ;;  %v1722_v20 = vadd.f32 %v1714_v17, %v1698_v35  ;;  %v848_v21 = vpop.f32.mrf.mxu1  ;;  %v901_v22 = vpop.f32.mrf.mxu0 }
 0x129   : > { %v1694_v23 = vsel %vm1686_vm3, %v848_v21, 0.0  ;;  %v1738_v24 = vsel %vm1730_vm4, %v901_v22, 0.0  ;;  %vm1734_vm3 = vcmp.eq.s32.totalorder %v2959_v56, 9  ;;  %vm1778_vm4 = vcmp.eq.s32.totalorder %v2984_v3, 11 }
 0x12a   : > { %v1702_v25 = vadd.f32 %v1694_v23, %v1678_v19  ;;  %v1746_v27 = vadd.f32 %v1738_v24, %v1722_v20  ;;  %v850_v28 = vpop.f32.mrf.mxu1  ;;  %v903_v29 = vpop.f32.mrf.mxu0 }
 0x12b   : > { %v1671_v30 = vsel %vm1663_vm5, %v850_v28, 0.0  ;;  %v1715_v31 = vsel %vm1707_vm6, %v903_v29, 0.0  ;;  %vm1711_vm5 = vcmp.eq.s32.totalorder %v2977_v60, 8  ;;  %vm1755_vm6 = vcmp.eq.s32.totalorder %v3001_v18, 10 }
 0x12c   : > { %v1679_v32 = vadd.f32 %v1671_v30, %v1655_v47  ;;  %v1723_v33 = vadd.f32 %v1715_v31, %v1699_v48  ;;  %v852_v34 = vpop.f32.mrf.mxu1  ;;  %v905_v35 = vpop.f32.mrf.mxu0 }
 0x12d   : > { %v1695_v36 = vsel %vm1687_vm7, %v852_v34, 0.0  ;;  %v1739_v37 = vsel %vm1731_vm8, %v905_v35, 0.0  ;;  %vm1735_vm7 = vcmp.eq.s32.totalorder %v2977_v60, 9  ;;  %vm1779_vm8 = vcmp.eq.s32.totalorder %v3001_v18, 11 }
 0x12e   : > { %v1703_v38 = vadd.f32 %v1695_v36, %v1679_v32  ;;  %v1747_v39 = vadd.f32 %v1739_v37, %v1723_v33  ;;  %v909_v40 = vpop.f32.mrf.mxu0  ;;  %v962_v41 = vpop.f32.mrf.mxu1 }
 0x12f   : > { %v1716_v43 = vsel %vm1708_vm9, %v909_v40, 0.0  ;;  %v1760_v44 = vsel %vm1752_vm10, %v962_v41, 0.0  ;;  %vm1756_vm9 = vcmp.eq.s32.totalorder %v3008_v26, 10  ;;  %vm1800_vm10 = vcmp.eq.s32.totalorder %v2954_v55, 12 }
 0x130   : > { %v1724_v45 = vadd.f32 %v1716_v43, %v1700_v62  ;;  %v1768_v46 = vadd.f32 %v1760_v44, %v1744_v63  ;;  %v911_v47 = vpop.f32.mrf.mxu0  ;;  %v964_v48 = vpop.f32.mrf.mxu1 }
 0x131   : > { %v1740_v5 = vsel %vm1732_vm11, %v911_v47, 0.0  ;;  %v1784_v49 = vsel %vm1776_vm12, %v964_v48, 0.0  ;;  %vm1780_vm11 = vcmp.eq.s32.totalorder %v3008_v26, 11  ;;  %vm1824_vm12 = vcmp.eq.s32.totalorder %v2954_v55, 13 }
 0x132   : > { %v1748_v50 = vadd.f32 %v1740_v5, %v1724_v45  ;;  %v1792_v51 = vadd.f32 %v1784_v49, %v1768_v46  ;;  %v913_v52 = vpop.f32.mrf.mxu0  ;;  %v966_v53 = vpop.f32.mrf.mxu1 }
 0x133   : > { %v1717_v54 = vsel %vm1709_vm13, %v913_v52, 0.0  ;;  %v1761_v58 = vsel %vm1753_vm14, %v966_v53, 0.0  ;;  %vm1757_vm13 = vcmp.eq.s32.totalorder %v3019_v42, 10  ;;  %vm1801_vm14 = vcmp.eq.s32.totalorder %v2965_v57, 12 }
 0x134   : > { %v1725_v59 = vadd.f32 %v1717_v54, %v1701_v11  ;;  %v1769_v61 = vadd.f32 %v1761_v58, %v1745_v12  ;;  %v915_v62 = vpop.f32.mrf.mxu0  ;;  %v968_v63 = vpop.f32.mrf.mxu1 }
 0x135   : > { %v1741_v15 = vsel %vm1733_vm15, %v915_v62, 0.0  ;;  %v1785_v0 = vsel %vm1777_vm0, %v968_v63, 0.0  ;;  %vm1781_vm15 = vcmp.eq.s32.totalorder %v3019_v42, 11  ;;  %vm1825_vm0 = vcmp.eq.s32.totalorder %v2965_v57, 13 }
 0x136   : > { %v1749_v1 = vadd.f32 %v1741_v15, %v1725_v59  ;;  %v1793_v2 = vadd.f32 %v1785_v0, %v1769_v61  ;;  %v919_v4 = vpop.f32.mrf.mxu0  ;;  %v972_v6 = vpop.f32.mrf.mxu1 }
 0x137   : > { %v1718_v7 = vsel %vm1710_vm1, %v919_v4, 0.0  ;;  %v1762_v8 = vsel %vm1754_vm2, %v972_v6, 0.0  ;;  %vm1758_vm1 = vcmp.eq.s32.totalorder %v2959_v56, 10  ;;  %vm1802_vm2 = vcmp.eq.s32.totalorder %v2984_v3, 12 }
 0x138   : > { %v1726_v9 = vadd.f32 %v1718_v7, %v1702_v25  ;;  %v1770_v10 = vadd.f32 %v1762_v8, %v1746_v27  ;;  %v921_v11 = vpop.f32.mrf.mxu0  ;;  %v974_v12 = vpop.f32.mrf.mxu1 }
 0x139   : > { %v1742_v13 = vsel %vm1734_vm3, %v921_v11, 0.0  ;;  %v1786_v14 = vsel %vm1778_vm4, %v974_v12, 0.0  ;;  %vm1782_vm3 = vcmp.eq.s32.totalorder %v2959_v56, 11  ;;  %vm1826_vm4 = vcmp.eq.s32.totalorder %v2984_v3, 13 }
 0x13a   : > { %v1750_v16 = vadd.f32 %v1742_v13, %v1726_v9  ;;  %v1794_v17 = vadd.f32 %v1786_v14, %v1770_v10  ;;  %v923_v19 = vpop.f32.mrf.mxu0  ;;  %v976_v20 = vpop.f32.mrf.mxu1 }
 0x13b   : > { %v1719_v21 = vsel %vm1711_vm5, %v923_v19, 0.0  ;;  %v1763_v22 = vsel %vm1755_vm6, %v976_v20, 0.0  ;;  %vm1759_vm5 = vcmp.eq.s32.totalorder %v2977_v60, 10  ;;  %vm1803_vm6 = vcmp.eq.s32.totalorder %v3001_v18, 12 }
 0x13c   : > { %v1727_v23 = vadd.f32 %v1719_v21, %v1703_v38  ;;  %v1771_v24 = vadd.f32 %v1763_v22, %v1747_v39  ;;  %v925_v25 = vpop.f32.mrf.mxu0  ;;  %v978_v27 = vpop.f32.mrf.mxu1 }
 0x13d   : > { %v1743_v28 = vsel %vm1735_vm7, %v925_v25, 0.0  ;;  %v1787_v29 = vsel %vm1779_vm8, %v978_v27, 0.0  ;;  %vm1783_vm7 = vcmp.eq.s32.totalorder %v2977_v60, 11  ;;  %vm1827_vm8 = vcmp.eq.s32.totalorder %v3001_v18, 13 }
 0x13e   : > { %v1751_v30 = vadd.f32 %v1743_v28, %v1727_v23  ;;  %v1795_v31 = vadd.f32 %v1787_v29, %v1771_v24  ;;  %v982_v32 = vpop.f32.mrf.mxu1  ;;  %v1035_v33 = vpop.f32.mrf.mxu0 }
 0x13f   : > { %v1764_v34 = vsel %vm1756_vm9, %v982_v32, 0.0  ;;  %v1808_v35 = vsel %vm1800_vm10, %v1035_v33, 0.0  ;;  %vm1804_vm9 = vcmp.eq.s32.totalorder %v3008_v26, 12  ;;  %vm1828_vm10 = vcmp.eq.s32.totalorder %v3008_v26, 13 }
 0x140   : > { %v1772_v36 = vadd.f32 %v1764_v34, %v1748_v50  ;;  %v1816_v37 = vadd.f32 %v1808_v35, %v1792_v51  ;;  %v984_v38 = vpop.f32.mrf.mxu1  ;;  %v1037_v39 = vpop.f32.mrf.mxu0 }
 0x141   : > { %v1788_v40 = vsel %vm1780_vm11, %v984_v38, 0.0  ;;  %v1832_v41 = vsel %vm1824_vm12, %v1037_v39, 0.0  ;;  %vm1805_vm11 = vcmp.eq.s32.totalorder %v3019_v42, 12  ;;  %vm1829_vm12 = vcmp.eq.s32.totalorder %v3019_v42, 13 }
 0x142   : > { %v1796_v43 = vadd.f32 %v1788_v40, %v1772_v36  ;;  %v3097_v44 = vadd.f32 %v1832_v41, %v1816_v37  ;;  %v986_v45 = vpop.f32.mrf.mxu1  ;;  %v1039_v46 = vpop.f32.mrf.mxu0 }
 0x143   : > { %v1765_v47 = vsel %vm1757_vm13, %v986_v45, 0.0  ;;  %v1809_v48 = vsel %vm1801_vm14, %v1039_v46, 0.0  ;;  %vm1848_vm13 = vcmp.eq.s32.totalorder %v2954_v55, 14  ;;  %vm1872_vm14 = vcmp.eq.s32.totalorder %v2954_v55, 15 }
 0x144   : > { %v1773_v5 = vadd.f32 %v1765_v47, %v1749_v1  ;;  %v1817_v49 = vadd.f32 %v1809_v48, %v1793_v2  ;;  %v988_v50 = vpop.f32.mrf.mxu1  ;;  %v1041_v51 = vpop.f32.mrf.mxu0 }
 0x145   : > { %v1789_v52 = vsel %vm1781_vm15, %v988_v50, 0.0  ;;  %v1833_v53 = vsel %vm1825_vm0, %v1041_v51, 0.0  ;;  %vm1849_vm15 = vcmp.eq.s32.totalorder %v2965_v57, 14  ;;  %vm1873_vm0 = vcmp.eq.s32.totalorder %v2965_v57, 15 }
 0x146   : > { %v1797_v54 = vadd.f32 %v1789_v52, %v1773_v5  ;;  %v3103_v58 = vadd.f32 %v1833_v53, %v1817_v49  ;;  %v992_v59 = vpop.f32.mrf.mxu1  ;;  %v1045_v61 = vpop.f32.mrf.mxu0 }
 0x147   : > { %v1766_v62 = vsel %vm1758_vm1, %v992_v59, 0.0  ;;  %v1810_v63 = vsel %vm1802_vm2, %v1045_v61, 0.0  ;;  %vm1806_vm1 = vcmp.eq.s32.totalorder %v2959_v56, 12  ;;  %vm1850_vm2 = vcmp.eq.s32.totalorder %v2984_v3, 14 }
 0x148   : > { %v1774_v15 = vadd.f32 %v1766_v62, %v1750_v16  ;;  %v1818_v0 = vadd.f32 %v1810_v63, %v1794_v17  ;;  %v994_v1 = vpop.f32.mrf.mxu1  ;;  %v1047_v2 = vpop.f32.mrf.mxu0 }
 0x149   : > { %v1790_v4 = vsel %vm1782_vm3, %v994_v1, 0.0  ;;  %v1834_v6 = vsel %vm1826_vm4, %v1047_v2, 0.0  ;;  %vm1830_vm3 = vcmp.eq.s32.totalorder %v2959_v56, 13  ;;  %vm1878_vm4 = vcmp.eq.s32.totalorder %v2959_v56, 15 }
 0x14a   : > { %v3109_v7 = vadd.f32 %v1790_v4, %v1774_v15  ;;  %v3111_v8 = vadd.f32 %v1834_v6, %v1818_v0  ;;  %v996_v9 = vpop.f32.mrf.mxu1  ;;  %v1049_v10 = vpop.f32.mrf.mxu0 }
 0x14b   : > { %v1767_v11 = vsel %vm1759_vm5, %v996_v9, 0.0  ;;  %v1811_v12 = vsel %vm1803_vm6, %v1049_v10, 0.0  ;;  %vm1807_vm5 = vcmp.eq.s32.totalorder %v2977_v60, 12  ;;  %vm1851_vm6 = vcmp.eq.s32.totalorder %v3001_v18, 14 }
 0x14c   : > { %v1775_v13 = vadd.f32 %v1767_v11, %v1751_v30  ;;  %v1819_v14 = vadd.f32 %v1811_v12, %v1795_v31  ;;  %v998_v16 = vpop.f32.mrf.mxu1  ;;  %v1051_v17 = vpop.f32.mrf.mxu0 }
 0x14d   : > { %v1791_v19 = vsel %vm1783_vm7, %v998_v16, 0.0  ;;  %v1835_v20 = vsel %vm1827_vm8, %v1051_v17, 0.0  ;;  %vm1853_vm8 = vcmp.eq.s32.totalorder %v3019_v42, 14  ;;  %vm1897_vm7 = vcmp.eq.s32.totalorder %v2965_v57, 16 }
 0x14e   : > { %v3116_v21 = vadd.f32 %v1791_v19, %v1775_v13  ;;  %v3118_v22 = vadd.f32 %v1835_v20, %v1819_v14  ;;  %v1055_v23 = vpop.f32.mrf.mxu0  ;;  %v3120_v24 = vpop.f32.mrf.mxu1 }
 0x14f   : > { %v1812_v25 = vsel %vm1804_vm9, %v1055_v23, 0.0  ;;  %vm1852_vm9 = vcmp.eq.s32.totalorder %v3008_v26, 14 }
 0x150   : > { %v1820_v27 = vadd.f32 %v1812_v25, %v1796_v43  ;;  %v1057_v28 = vpop.f32.mrf.mxu0  ;;  %v3123_v29 = vpop.f32.mrf.mxu1 }
 0x151   : > { %v1836_v30 = vsel %vm1828_vm10, %v1057_v28, 0.0  ;;  %vm1896_vm10 = vcmp.eq.s32.totalorder %v2954_v55, 16 }
 0x152   : > { %v3126_v31 = vadd.f32 %v1836_v30, %v1820_v27  ;;  %v1059_v32 = vpop.f32.mrf.mxu0  ;;  %v1112_v33 = vpop.f32.mrf.mxu1  ;;  %v1856_v30 = vsel %vm1848_vm13, %v3120_v24, 0.0  ;;  %vm1921_vm13 = vcmp.eq.s32.totalorder %v2965_v57, 17 }
 0x153   : > { %v1813_v34 = vsel %vm1805_vm11, %v1059_v32, 0.0  ;;  %v1857_v32 = vsel %vm1849_vm15, %v1112_v33, 0.0  ;;  %vm1854_vm15 = vcmp.eq.s32.totalorder %v2959_v56, 14  ;;  %v1864_v33 = vadd.f32 %v1856_v30, %v3097_v44 }
 0x154   : > { %v1821_v35 = vadd.f32 %v1813_v34, %v1797_v54  ;;  %v1061_v36 = vpop.f32.mrf.mxu0  ;;  %v3129_v37 = vpop.f32.mrf.mxu1  ;;  %v1880_v44 = vsel %vm1872_vm14, %v3123_v29, 0.0  ;;  %v1865_v30 = vadd.f32 %v1857_v32, %v3103_v58  ;;  %vm1900_vm11 = vcmp.eq.s32.totalorder %v3008_v26, 16  ;;  %v3270_v58 = vld [vmem:[%s3725_s0] sm:$0xff] }
 0x155   : > { %v1837_v38 = vsel %vm1829_vm12, %v1061_v36, 0.0  ;;  %vm1898_vm12 = vcmp.eq.s32.totalorder %v2984_v3, 16  ;;  %vm3737_vm14 = vcmp.eq.s32.totalorder %v2977_v60, 13 }
 0x156   : > { %v3131_v39 = vadd.f32 %v1837_v38, %v1821_v35  ;;  %v1065_v40 = vpop.f32.mrf.mxu0  ;;  %v1118_v41 = vpop.f32.mrf.mxu1 }
 0x157   : > { %v1814_v35 = vsel %vm1806_vm1, %v1065_v40, 0.0  ;;  %v1858_v36 = vsel %vm1850_vm2, %v1118_v41, 0.0  ;;  %vm1855_vm1 = vcmp.eq.s32.totalorder %v2977_v60, 14  ;;  %vm1899_vm2 = vcmp.eq.s32.totalorder %v3001_v18, 16 }
 0x158   : > { %v3133_v43 = vpop.f32.mrf.mxu0  ;;  %v3135_v45 = vpop.f32.mrf.mxu1 }
 0x15a   : > { %v3137_v46 = vpop.f32.mrf.mxu0  ;;  %v3139_v47 = vpop.f32.mrf.mxu1 }
 0x15b   : > { %v1815_v38 = vsel %vm1807_vm5, %v3137_v46, 0.0  ;;  %v1859_v46 = vsel %vm1851_vm6, %v3139_v47, 0.0  ;;  %vm1879_vm5 = vcmp.eq.s32.totalorder %v2977_v60, 15  ;;  %vm1901_vm6 = vcmp.eq.s32.totalorder %v3019_v42, 16 }
 0x15c   : > { %v3141_v48 = vpop.f32.mrf.mxu0  ;;  %v3143_v5 = vpop.f32.mrf.mxu1 }
 0x15e   : > { %v3145_v49 = vpop.f32.mrf.mxu1  ;;  %v3147_v50 = vpop.f32.mrf.mxu0 }
 0x15f   : > { %v1860_v32 = vsel %vm1852_vm9, %v3145_v49, 0.0  ;;  %vm3740_vm9 = vcmp.eq.s32.totalorder %v3008_v26, 15 }
 0x160   : > { %v3149_v51 = vpop.f32.mrf.mxu1  ;;  %v3151_v52 = vpop.f32.mrf.mxu0 }
 0x162   : > { %v3153_v53 = vpop.f32.mrf.mxu1  ;;  %v3155_v54 = vpop.f32.mrf.mxu0 }
 0x164   : > { %v3157_v59 = vpop.f32.mrf.mxu1  ;;  %v3159_v61 = vpop.f32.mrf.mxu0 }
 0x166   : > { %v3161_v62 = vpop.f32.mrf.mxu1  ;;  %v3163_v63 = vpop.f32.mrf.mxu0 }
 0x168   : > { %v3165_v15 = vpop.f32.mrf.mxu1  ;;  %v3167_v0 = vpop.f32.mrf.mxu0 }
 0x16a   : > { %v3169_v1 = vpop.f32.mrf.mxu1  ;;  %v3171_v2 = vpop.f32.mrf.mxu0 }
 0x16c   : > { %v3173_v4 = vpop.f32.mrf.mxu1  ;;  %v3175_v6 = vpop.f32.mrf.mxu0 }
 0x16e   : > { %v3177_v9 = vpop.f32.mrf.mxu0  ;;  %v3179_v10 = vpop.f32.mrf.mxu1 }
 0x170   : > { %v3181_v11 = vpop.f32.mrf.mxu0  ;;  %v3183_v12 = vpop.f32.mrf.mxu1 }
 0x172   : > { %v3185_v13 = vpop.f32.mrf.mxu0  ;;  %v3187_v14 = vpop.f32.mrf.mxu1 }
 0x174   : > { %v3189_v16 = vpop.f32.mrf.mxu0  ;;  %v3191_v17 = vpop.f32.mrf.mxu1 }
 0x176   : > { %v3193_v19 = vpop.f32.mrf.mxu0  ;;  %v3195_v20 = vpop.f32.mrf.mxu1 }
 0x178   : > { %v3201_v23 = vpop.f32.mrf.mxu0  ;;  %v3203_v25 = vpop.f32.mrf.mxu1 }
 0x17a   : > { %v3213_v27 = vpop.f32.mrf.mxu0  ;;  %v3215_v28 = vpop.f32.mrf.mxu1 }
 0x17c   : > { %v3229_v34 = vpop.f32.mrf.mxu0  ;;  %v3231_v24 = vpop.f32.mrf.mxu1 }
 0x17d   : > { %3731 = vst [vmem:[#allocation5_spill] sm:$0xff] %v3231_v24  ;;  %v1866_v24 = vadd.f32 %v1858_v36, %v3111_v8  ;;  %v1823_v8 = vadd.f32 %v1815_v38, %v3116_v21  ;;  %v1867_v36 = vadd.f32 %v1859_v46, %v3118_v22  ;;  %v3302_v21 = vld [vmem:[%s3725_s0 + $0x30] sm:$0xff]  ;;  %v1904_v38 = vsel %vm1896_vm10, %v3147_v50, 0.0  ;;  %v3327_v46 = vld [vmem:[%s3725_s0 + $0x38] sm:$0xff] }
 0x17e   : > { %v3248_v40 = vpop.f32.mrf.mxu1  ;;  %v3250_v41 = vpop.f32.mrf.mxu0  ;;  %v3308_v22 = vld [vmem:[%s3725_s0 + $0x10] sm:$0xff]  ;;  %vm1968_vm10 = vcmp.eq.s32.totalorder %v3270_v58, 19 }
 0x17f   : > { %3732 = vst [vmem:[#allocation6_spill] sm:$0xff] %v3248_v40  ;;  %3733 = vst [vmem:[#allocation7_spill] sm:$0xff] %v3250_v41  ;;  %v1881_v40 = vsel %vm1873_vm0, %v3129_v37, 0.0  ;;  %v1822_v41 = vadd.f32 %v1814_v35, %v3109_v7  ;;  %v1838_v37 = vsel %vm1830_vm3, %v3133_v43, 0.0  ;;  %vm3736_vm0 = vcmp.eq.s32.totalorder %v2984_v3, 15  ;;  %v3296_v43 = vld [vmem:[%s3725_s0 + $0x8] sm:$0xff] }
 0x180   : > { %v3273_v29 = vpop.f32.mrf.mxu1  ;;  %v3275_v47 = vpop.f32.mrf.mxu0  ;;  %v1882_v7 = vsel %vm3736_vm0, %v3135_v45, 0.0  ;;  %v1888_v35 = vadd.f32 %v1880_v44, %v1864_v33  ;;  %vm1924_vm3 = vcmp.eq.s32.totalorder %v3008_v26, 17  ;;  %v1889_v49 = vadd.f32 %v1881_v40, %v1865_v30 }
 0x181   : > { %3734 = vst [vmem:[#allocation8_spill] sm:$0xff] %v3273_v29  ;;  %3735 = vst [vmem:[#allocation9_spill] sm:$0xff] %v3275_v47  ;;  %v1839_v47 = vsel %vm3737_vm14, %v3141_v48, 0.0  ;;  %vm1946_vm14 = vcmp.eq.s32.totalorder %v3308_v22, 18  ;;  %vm3739_vm0 = vcmp.eq.s32.totalorder %v3001_v18, 15  ;;  %v1861_v44 = vsel %vm1853_vm8, %v3153_v53, 0.0 }
 0x182   : > { %v3311_v45 = vpop.f32.mrf.mxu1  ;;  %v3313_v48 = vpop.f32.mrf.mxu0  ;;  %v1883_v33 = vsel %vm3739_vm0, %v3143_v5, 0.0  ;;  %v1846_v40 = vadd.f32 %v1838_v37, %v1822_v41  ;;  %v1890_v30 = vadd.f32 %v1882_v7, %v1866_v24  ;;  %v1868_v29 = vadd.f32 %v1860_v32, %v3126_v31 }
 0x183   : > { %3738 = vst [vmem:[#allocation10_spill] sm:$0xff] %v3313_v48  ;;  %v1905_v5 = vsel %vm1897_vm7, %v3155_v54, 0.0  ;;  %vm1970_vm0 = vcmp.eq.s32.totalorder %v3308_v22, 19  ;;  %v1847_v48 = vadd.f32 %v1839_v47, %v1823_v8  ;;  %v1884_v24 = vsel %vm3740_vm9, %v3149_v51, 0.0 }
 0x184   : > { %v3337_v50 = vpop.f32.mrf.mxu1  ;;  %v3339_v53 = vpop.f32.mrf.mxu0  ;;  %v1862_v31 = vsel %vm1854_vm15, %v3161_v62, 0.0  ;;  %v1906_v54 = vsel %vm1898_vm12, %v3163_v63, 0.0  ;;  %v1891_v41 = vadd.f32 %v1883_v33, %v1867_v36  ;;  %v1912_v37 = vadd.f32 %v1904_v38, %v1888_v35 }
 0x185   : > { %v1869_v7 = vadd.f32 %v1861_v44, %v3131_v39  ;;  %v1863_v47 = vsel %vm1855_vm1, %v3169_v1, 0.0  ;;  %vm1969_vm9 = vcmp.eq.s32.totalorder %v3296_v43, 19  ;;  %vm1926_vm8 = vcmp.eq.s32.totalorder %v3302_v21, 17 }
 0x186   : > { %v3357_v51 = vpop.f32.mrf.mxu1  ;;  %v3359_v62 = vpop.f32.mrf.mxu0  ;;  %vm1994_vm12 = vcmp.eq.s32.totalorder %v3308_v22, 20  ;;  %vm3741_vm15 = vcmp.eq.s32.totalorder %v2954_v55, 17  ;;  %v1913_v8 = vadd.f32 %v1905_v5, %v1889_v49  ;;  %vm3742_vm7 = vcmp.eq.s32.totalorder %v3019_v42, 15  ;;  %v3378_v55 = vld [vmem:[%s3725_s0 + $0x18] sm:$0xff] }
 0x187   : > { %v1928_v63 = vsel %vm3741_vm15, %v3151_v52, 0.0  ;;  %v1885_v39 = vsel %vm3742_vm7, %v3157_v59, 0.0  ;;  %v1907_v1 = vsel %vm1899_vm2, %v3171_v2, 0.0  ;;  %vm1927_vm1 = vcmp.eq.s32.totalorder %v3327_v46, 17  ;;  %v3384_v52 = vld [vmem:[%s3725_s0 + $0x20] sm:$0xff] }
 0x188   : > { %v1892_v32 = vadd.f32 %v1884_v24, %v1868_v29  ;;  %v1929_v35 = vsel %vm1921_vm13, %v3159_v61, 0.0  ;;  %v1870_v36 = vadd.f32 %v1862_v31, %v1846_v40  ;;  %v1914_v33 = vadd.f32 %v1906_v54, %v1890_v30  ;;  %v3388_v57 = vpop.f32.mrf.mxu1  ;;  %v3390_v59 = vpop.f32.mrf.mxu0 }
 0x189   : > { %vm1971_vm7 = vcmp.eq.s32.totalorder %v3378_v55, 19  ;;  %v1886_v61 = vsel %vm1878_vm4, %v3165_v15, 0.0  ;;  %vm3743_vm13 = vcmp.eq.s32.totalorder %v2984_v3, 17  ;;  %v1871_v29 = vadd.f32 %v1863_v47, %v1847_v48 }
 0x18a   : > { %v1930_v2 = vsel %vm3743_vm13, %v3167_v0, 0.0  ;;  %v1908_v49 = vsel %vm1900_vm11, %v3177_v9, 0.0  ;;  %v1936_v38 = vadd.f32 %v1928_v63, %v1912_v37  ;;  %v1893_v44 = vadd.f32 %v1885_v39, %v1869_v7  ;;  %v3407_v56 = vpop.f32.mrf.mxu1  ;;  %v3409_v3 = vpop.f32.mrf.mxu0 }
 0x18b   : > { %v1915_v40 = vadd.f32 %v1907_v1, %v1891_v41  ;;  %v1887_v30 = vsel %vm1879_vm5, %v3173_v4, 0.0  ;;  %vm1993_vm4 = vcmp.eq.s32.totalorder %v3296_v43, 20  ;;  %vm2018_vm15 = vcmp.eq.s32.totalorder %v3308_v22, 21  ;;  %v3444_v41 = vld [vmem:[%s3725_s0 + $0x28] sm:$0xff] }
 0x18c   : > { %v1937_v15 = vadd.f32 %v1929_v35, %v1913_v8  ;;  %vm3744_vm11 = vcmp.eq.s32.totalorder %v3001_v18, 17  ;;  %vm3745_vm2 = vcmp.eq.s32.totalorder %v3270_v58, 18  ;;  %v1954_v4 = vsel %vm1946_vm14, %v3195_v20, 0.0 }
 0x18d   : > { %v1931_v0 = vsel %vm3744_vm11, %v3175_v6, 0.0  ;;  %v1952_v60 = vsel %vm3745_vm2, %v3179_v10, 0.0  ;;  %vm1950_vm5 = vcmp.eq.s32.totalorder %v3302_v21, 18  ;;  %v1894_v9 = vadd.f32 %v1886_v61, %v1870_v36  ;;  %v3427_v6 = vpop.f32.mrf.mxu1  ;;  %v3429_v10 = vpop.f32.mrf.mxu0 }
 0x18e   : > { %v1938_v48 = vadd.f32 %v1930_v2, %v1914_v33  ;;  %v1916_v5 = vadd.f32 %v1908_v49, %v1892_v32  ;;  %v1909_v24 = vsel %vm1901_vm6, %v3185_v13, 0.0  ;;  %vm1972_vm13 = vcmp.eq.s32.totalorder %v3384_v52, 19 }
 0x18f   : > { %v1895_v20 = vadd.f32 %v1887_v30, %v1871_v29  ;;  %v1932_v31 = vsel %vm1924_vm3, %v3181_v11, 0.0  ;;  %vm3746_vm14 = vcmp.eq.s32.totalorder %v3296_v43, 18  ;;  %vm3747_vm6 = vcmp.eq.s32.totalorder %v3302_v21, 16  ;;  %v3452_v11 = vpop.f32.mrf.mxu0  ;;  %v3754_v30 = vld [vmem:[#allocation7_spill] sm:$0xff] }
 0x190   : > { %v1953_v54 = vsel %vm3746_vm14, %v3187_v14, 0.0  ;;  %v1910_v13 = vsel %vm3747_vm6, %v3193_v19, 0.0  ;;  %vm1973_vm2 = vcmp.eq.s32.totalorder %v3444_v41, 19  ;;  %v1939_v37 = vadd.f32 %v1931_v0, %v1915_v40  ;;  %v3454_v14 = vpop.f32.mrf.mxu1 }
 0x191   : > { %v1960_v7 = vadd.f32 %v1952_v60, %v1936_v38  ;;  %v1962_v47 = vadd.f32 %v1954_v4, %v1938_v48  ;;  %vm3748_vm3 = vcmp.eq.s32.totalorder %v3327_v46, 16  ;;  %v1976_v19 = vsel %vm1968_vm10, %v3183_v12, 0.0  ;;  %v3472_v35 = vpop.f32.mrf.mxu0  ;;  %v3751_v38 = vld [vmem:[#allocation5_spill] sm:$0xff] }
 0x192   : > { %v1911_v26 = vsel %vm3748_vm3, %v3213_v27, 0.0  ;;  %v1917_v63 = vadd.f32 %v1909_v24, %v1893_v44  ;;  %v1978_v8 = vsel %vm1970_vm0, %v3203_v25, 0.0  ;;  %vm3749_vm3 = vcmp.eq.s32.totalorder %v3001_v18, 18  ;;  %v3474_v25 = vpop.f32.mrf.mxu1  ;;  %v3752_v44 = vld [vmem:[#allocation6_spill] sm:$0xff] }
 0x193   : > { %v1955_v27 = vsel %vm3749_vm3, %v3215_v28, 0.0  ;;  %vm1974_vm11 = vcmp.eq.s32.totalorder %v3302_v21, 19  ;;  %vm1996_vm14 = vcmp.eq.s32.totalorder %v3384_v52, 20  ;;  %v1940_v39 = vadd.f32 %v1932_v31, %v1916_v5  ;;  %v3491_v49 = vpop.f32.mrf.mxu0  ;;  %v3757_v24 = vld [vmem:[#allocation10_spill] sm:$0xff] }
 0x194   : > { %v1961_v1 = vadd.f32 %v1953_v54, %v1937_v15  ;;  %vm3750_vm6 = vcmp.eq.s32.totalorder %v3019_v42, 17  ;;  %v1918_v12 = vadd.f32 %v1910_v13, %v1894_v9  ;;  %vm1951_vm10 = vcmp.eq.s32.totalorder %v3327_v46, 18 }
 0x195   : > { %v1933_v32 = vsel %vm3750_vm6, %v3189_v16, 0.0  ;;  %vm2066_vm0 = vcmp.eq.s32.totalorder %v3308_v22, 23  ;;  %vm2043_vm3 = vcmp.eq.s32.totalorder %v3378_v55, 22  ;;  %v1977_v18 = vsel %vm1969_vm9, %v3191_v17, 0.0  ;;  %v3493_v17 = vpop.f32.mrf.mxu1  ;;  %v3510_v9 = vpop.f32.mrf.mxu0 }
 0x196   : > { %v1934_v28 = vsel %vm1926_vm8, %v3201_v23, 0.0  ;;  %v1919_v16 = vadd.f32 %v1911_v26, %v1895_v20  ;;  %v2002_v36 = vsel %vm1994_vm12, %v3359_v62, 0.0  ;;  %v1984_v33 = vadd.f32 %v1976_v19, %v1960_v7  ;;  %v3760_v26 = vld [vmem:[#allocation9_spill] sm:$0xff] }
 0x197   : > { %v1986_v61 = vadd.f32 %v1978_v8, %v1962_v47  ;;  %v1963_v2 = vadd.f32 %v1955_v27, %v1939_v37  ;;  %v1935_v29 = vsel %vm1927_vm1, %v3229_v34, 0.0  ;;  %v1941_v23 = vadd.f32 %v1933_v32, %v1917_v63  ;;  %v3512_v48 = vpop.f32.mrf.mxu1  ;;  %v1357_v7 = vpop.f32.mrf.mxu0 }
 0x198   : > { %v1979_v62 = vsel %vm1971_vm7, %v3751_v38, 0.0  ;;  %vm3753_vm9 = vcmp.eq.s32.totalorder %v3384_v52, 18  ;;  %vm3755_vm12 = vcmp.eq.s32.totalorder %v3270_v58, 20  ;;  %vm2020_vm1 = vcmp.eq.s32.totalorder %v3384_v52, 21 }
 0x199   : > { %v1956_v40 = vsel %vm3753_vm9, %v3752_v44, 0.0  ;;  %v2000_v34 = vsel %vm3755_vm12, %v3754_v30, 0.0  ;;  %v1985_v15 = vadd.f32 %v1977_v18, %v1961_v1  ;;  %v1942_v0 = vadd.f32 %v1934_v28, %v1918_v12  ;;  %v1410_v47 = vpop.f32.mrf.mxu1  ;;  %v3545_v32 = vpop.f32.mrf.mxu0 }
 0x19a   : > { %vm3756_vm8 = vcmp.eq.s32.totalorder %v3019_v42, 18  ;;  %v2010_v4 = vadd.f32 %v2002_v36, %v1986_v61  ;;  %vm1998_vm7 = vcmp.eq.s32.totalorder %v3302_v21, 20  ;;  %vm2067_vm9 = vcmp.eq.s32.totalorder %v3378_v55, 23 }
 0x19b   : > { %v1957_v60 = vsel %vm3756_vm8, %v3311_v45, 0.0  ;;  %v1943_v5 = vadd.f32 %v1935_v29, %v1919_v16  ;;  %v2001_v20 = vsel %vm1993_vm4, %v3757_v24, 0.0  ;;  %v2026_v42 = vsel %vm2018_vm15, %v3390_v59, 0.0  ;;  %v3759_v59 = vld [vmem:[#allocation8_spill] sm:$0xff]  ;;  %v1412_v12 = vpop.f32.mrf.mxu1 }
 0x19c   : > { %vm3758_vm8 = vcmp.eq.s32.totalorder %v3378_v55, 20  ;;  %v1987_v31 = vadd.f32 %v1979_v62, %v1963_v2  ;;  %v1964_v54 = vadd.f32 %v1956_v40, %v1940_v39  ;;  %v2008_v13 = vadd.f32 %v2000_v34, %v1984_v33  ;;  %v1361_v2 = vpop.f32.mrf.mxu0 }
 0x19d   : > { %v2003_v45 = vsel %vm3758_vm8, %v3409_v3, 0.0  ;;  %v1958_v37 = vsel %vm1950_vm5, %v3357_v51, 0.0  ;;  %vm2065_vm12 = vcmp.eq.s32.totalorder %v3296_v43, 23  ;;  %vm2044_vm4 = vcmp.eq.s32.totalorder %v3384_v52, 22  ;;  %v1414_v29 = vpop.f32.mrf.mxu1 }
 0x19e   : > { %v1980_v3 = vsel %vm1972_vm13, %v3759_v59, 0.0  ;;  %vm3761_vm8 = vcmp.eq.s32.totalorder %v3270_v58, 21  ;;  %v1965_v63 = vadd.f32 %v1957_v60, %v1941_v23  ;;  %vm3762_vm6 = vcmp.eq.s32.totalorder %v3308_v22, 22  ;;  %v3576_v40 = vpop.f32.mrf.mxu0 }
 0x19f   : > { %v2024_v19 = vsel %vm3761_vm8, %v3760_v26, 0.0  ;;  %v2050_v51 = vsel %vm3762_vm6, %v1410_v47, 0.0  ;;  %v2009_v8 = vadd.f32 %v2001_v20, %v1985_v15  ;;  %v1981_v27 = vsel %vm1973_vm2, %v3337_v50, 0.0  ;;  %v1416_v30 = vpop.f32.mrf.mxu1 }
 0x1a0   : > { %v2034_v39 = vadd.f32 %v2026_v42, %v2010_v4  ;;  %v2011_v1 = vadd.f32 %v2003_v45, %v1987_v31  ;;  %vm2022_vm13 = vcmp.eq.s32.totalorder %v3302_v21, 21  ;;  %vm1999_vm8 = vcmp.eq.s32.totalorder %v3327_v46, 20  ;;  %v2367_v45 = vpop.f32.mrf.mxu0 }
 0x1a1   : > { %vm2091_vm15 = vcmp.eq.s32.totalorder %v3378_v55, 24  ;;  %vm3763_vm6 = vcmp.eq.s32.totalorder %v3296_v43, 21  ;;  %v1966_v28 = vadd.f32 %v1958_v37, %v1942_v0  ;;  %vm3764_vm2 = vcmp.eq.s32.totalorder %v3378_v55, 21  ;;  %v1420_v42 = vpop.f32.mrf.mxu1 }
 0x1a2   : > { %v2025_v18 = vsel %vm3763_vm6, %v3339_v53, 0.0  ;;  %v2027_v50 = vsel %vm3764_vm2, %v3429_v10, 0.0  ;;  %vm3765_vm5 = vcmp.eq.s32.totalorder %v3270_v58, 22  ;;  %v2032_v36 = vadd.f32 %v2024_v19, %v2008_v13  ;;  %v1473_v59 = vpop.f32.mrf.mxu0 }
 0x1a3   : > { %v2048_v16 = vsel %vm3765_vm5, %v3454_v14, 0.0  ;;  %v1982_v33 = vsel %vm1974_vm11, %v3388_v57, 0.0  ;;  %v2004_v61 = vsel %vm1996_vm14, %v3452_v11, 0.0  ;;  %v2058_v53 = vadd.f32 %v2050_v51, %v2034_v39  ;;  %v1422_v47 = vpop.f32.mrf.mxu1 }
 0x1a4   : > { %vm2068_vm6 = vcmp.eq.s32.totalorder %v3384_v52, 23  ;;  %vm2045_vm2 = vcmp.eq.s32.totalorder %v3444_v41, 22  ;;  %vm2089_vm5 = vcmp.eq.s32.totalorder %v3296_v43, 24  ;;  %v1988_v10 = vadd.f32 %v1980_v3, %v1964_v54 }
 0x1a5   : > { %v1959_v14 = vsel %vm1951_vm10, %v3407_v56, 0.0  ;;  %v2074_v57 = vsel %vm2066_vm0, %v1412_v12, 0.0  ;;  %v2051_v11 = vsel %vm2043_vm3, %v1414_v29, 0.0  ;;  %v1989_v23 = vadd.f32 %v1981_v27, %v1965_v63  ;;  %v1424_v51 = vpop.f32.mrf.mxu1 }
 0x1a6   : > { %v2033_v38 = vadd.f32 %v2025_v18, %v2009_v8  ;;  %v2035_v62 = vadd.f32 %v2027_v50, %v2011_v1  ;;  %v2056_v44 = vadd.f32 %v2048_v16, %v2032_v36  ;;  %vm2023_vm11 = vcmp.eq.s32.totalorder %v3327_v46, 21  ;;  %v2368_v8 = vpop.f32.mrf.mxu0 }
 0x1a7   : > { %v1990_v56 = vadd.f32 %v1982_v33, %v1966_v28  ;;  %v2012_v34 = vadd.f32 %v2004_v61, %v1988_v10  ;;  %vm3766_vm10 = vcmp.eq.s32.totalorder %v3270_v58, 23  ;;  %vm3767_vm0 = vcmp.eq.s32.totalorder %v3296_v43, 22  ;;  %v1426_v50 = vpop.f32.mrf.mxu1 }
 0x1a8   : > { %v2072_v15 = vsel %vm3766_vm10, %v3474_v25, 0.0  ;;  %v2049_v0 = vsel %vm3767_vm0, %v3493_v17, 0.0  ;;  %v1967_v60 = vadd.f32 %v1959_v14, %v1943_v5  ;;  %v2028_v4 = vsel %vm2020_vm1, %v3472_v35, 0.0 }
 0x1a9   : > { %v2082_v24 = vadd.f32 %v2074_v57, %v2058_v53  ;;  %v2059_v20 = vadd.f32 %v2051_v11, %v2035_v62  ;;  %vm2069_vm3 = vcmp.eq.s32.totalorder %v3444_v41, 23  ;;  %vm2070_vm14 = vcmp.eq.s32.totalorder %v3302_v21, 23 }
 0x1aa   : > { %vm3768_vm10 = vcmp.eq.s32.totalorder %v3444_v41, 20  ;;  %v2006_v17 = vsel %vm1998_vm7, %v1357_v7, 0.0  ;;  %v2075_v5 = vsel %vm2067_vm9, %v1416_v30, 0.0  ;;  %vm3769_vm1 = vcmp.eq.s32.totalorder %v3308_v22, 24 }
 0x1ab   : > { %v2005_v25 = vsel %vm3768_vm10, %v3491_v49, 0.0  ;;  %v2098_v35 = vsel %vm3769_vm1, %v2367_v45, 0.0  ;;  %vm3770_vm0 = vcmp.eq.s32.totalorder %v3327_v46, 19  ;;  %v2080_v54 = vadd.f32 %v2072_v15, %v2056_v44 }
 0x1ac   : > { %v1983_v31 = vsel %vm3770_vm0, %v3427_v6, 0.0  ;;  %v2057_v13 = vadd.f32 %v2049_v0, %v2033_v38  ;;  %v2106_v37 = vadd.f32 %v2098_v35, %v2082_v24  ;;  %v2036_v49 = vadd.f32 %v2028_v4, %v2012_v34 }
 0x1ad   : > { %v2073_v7 = vsel %vm2065_vm12, %v3512_v48, 0.0  ;;  %v2052_v3 = vsel %vm2044_vm4, %v1420_v42, 0.0  ;;  %vm3771_vm7 = vcmp.eq.s32.totalorder %v3270_v58, 24  ;;  %v2013_v26 = vadd.f32 %v2005_v25, %v1989_v23 }
 0x1ae   : > { %v2096_v22 = vsel %vm3771_vm7, %v1473_v59, 0.0  ;;  %v2014_v19 = vadd.f32 %v2006_v17, %v1990_v56  ;;  %v2083_v63 = vadd.f32 %v2075_v5, %v2059_v20  ;;  %2114 = vst [vmem:[%s3615_s9 + $0x10] sm:$0xff] %v2106_v37  ;;  %vm3772_vm9 = vcmp.eq.s32.totalorder %v3444_v41, 21 }
 0x1af   : > { %v2104_v6 = vadd.f32 %v2096_v22, %v2080_v54  ;;  %v2029_v48 = vsel %vm3772_vm9, %v3510_v9, 0.0  ;;  %v2030_v58 = vsel %vm2022_vm13, %v3545_v32, 0.0  ;;  %v2007_v27 = vsel %vm1999_vm8, %v1361_v2, 0.0  ;;  %v1476_v9 = vpop.f32.mrf.mxu0  ;;  %v1430_v2 = vpop.f32.mrf.mxu1 }
 0x1b0   : > { %v2099_v39 = vsel %vm2091_vm15, %v2368_v8, 0.0  ;;  %v1991_v1 = vadd.f32 %v1983_v31, %v1967_v60  ;;  %v2081_v12 = vadd.f32 %v2073_v7, %v2057_v13  ;;  %v2060_v18 = vadd.f32 %v2052_v3, %v2036_v49 }
 0x1b1   : > { %2112 = vst [vmem:[%s3615_s9] sm:$0xff] %v2104_v6  ;;  %v2107_v28 = vadd.f32 %v2099_v39, %v2083_v63  ;;  %v2076_v16 = vsel %vm2068_vm6, %v1422_v47, 0.0  ;;  %v2053_v32 = vsel %vm2045_vm2, %v1424_v51, 0.0  ;;  %v2097_v55 = vsel %vm2089_vm5, %v1476_v9, 0.0  ;;  %v2371_v29 = vpop.f32.mrf.mxu0  ;;  %v1432_v23 = vpop.f32.mrf.mxu1 }
 0x1b2   : > { %vm2092_vm12 = vcmp.eq.s32.totalorder %v3384_v52, 24  ;;  %v2037_v36 = vadd.f32 %v2029_v48, %v2013_v26  ;;  %v2038_v33 = vadd.f32 %v2030_v58, %v2014_v19  ;;  %v2015_v61 = vadd.f32 %v2007_v27, %v1991_v1 }
 0x1b3   : > { %2115 = vst [vmem:[%s3615_s9 + $0x18] sm:$0xff] %v2107_v28  ;;  %v2105_v53 = vadd.f32 %v2097_v55, %v2081_v12  ;;  %v2031_v10 = vsel %vm2023_vm11, %v3576_v40, 0.0  ;;  %vm3773_vm4 = vcmp.eq.s32.totalorder %v3302_v21, 22  ;;  %vm2094_vm15 = vcmp.eq.s32.totalorder %v3302_v21, 24  ;;  %v1489_v38 = vpop.f32.mrf.mxu0  ;;  %v1434_v15 = vpop.f32.mrf.mxu1 }
 0x1b4   : > { %v2054_v43 = vsel %vm3773_vm4, %v1430_v2, 0.0  ;;  %v2084_v14 = vadd.f32 %v2076_v16, %v2060_v18  ;;  %v2061_v57 = vadd.f32 %v2053_v32, %v2037_v36  ;;  %vm2047_vm13 = vcmp.eq.s32.totalorder %v3327_v46, 22 }
 0x1b5   : > { %2113 = vst [vmem:[%s3615_s9 + $0x8] sm:$0xff] %v2105_v53  ;;  %v2062_v11 = vadd.f32 %v2054_v43, %v2038_v33  ;;  %v2077_v62 = vsel %vm2069_vm3, %v1426_v50, 0.0  ;;  %v2078_v44 = vsel %vm2070_vm14, %v1432_v23, 0.0  ;;  %v2100_v40 = vsel %vm2092_vm12, %v1489_v38, 0.0  ;;  %v2372_v0 = vpop.f32.mrf.mxu0  ;;  %v1436_v42 = vpop.f32.mrf.mxu1 }
 0x1b6   : > { %vm2071_vm8 = vcmp.eq.s32.totalorder %v3327_v46, 23  ;;  %v2039_v30 = vadd.f32 %v2031_v10, %v2015_v61  ;;  %v2108_v34 = vadd.f32 %v2100_v40, %v2084_v14  ;;  %vm2093_vm6 = vcmp.eq.s32.totalorder %v3444_v41, 24 }
 0x1b7   : > { %v2086_v56 = vadd.f32 %v2078_v44, %v2062_v11  ;;  %v2102_v60 = vsel %vm2094_vm15, %v2371_v29, 0.0  ;;  %v2055_v4 = vsel %vm2047_vm13, %v1434_v15, 0.0  ;;  %v2085_v24 = vadd.f32 %v2077_v62, %v2061_v57  ;;  %v1492_v45 = vpop.f32.mrf.mxu0 }
 0x1b8   : > { %2116 = vst [vmem:[%s3615_s9 + $0x20] sm:$0xff] %v2108_v34  ;;  %v2063_v52 = vadd.f32 %v2055_v4, %v2039_v30  ;;  %vm2095_vm2 = vcmp.eq.s32.totalorder %v3327_v46, 24  ;;  %v2079_v41 = vsel %vm2071_vm8, %v1436_v42, 0.0  ;;  %v2101_v21 = vsel %vm2093_vm6, %v1492_v45, 0.0 }
 0x1b9   : > { %v2110_v20 = vadd.f32 %v2102_v60, %v2086_v56  ;;  %v2109_v17 = vadd.f32 %v2101_v21, %v2085_v24  ;;  %v2103_v5 = vsel %vm2095_vm2, %v2372_v0, 0.0 }
 0x1ba   : > { %v2087_v25 = vadd.f32 %v2079_v41, %v2063_v52 }
 0x1bb   : > { %2118 = vst [vmem:[%s3615_s9 + $0x30] sm:$0xff] %v2110_v20  ;;  %2117 = vst [vmem:[%s3615_s9 + $0x28] sm:$0xff] %v2109_v17 }
 0x1bc   : > { %v2111_v35 = vadd.f32 %v2103_v5, %v2087_v25 }
 0x1be   : > { %2119 = vst [vmem:[%s3615_s9 + $0x38] sm:$0xff] %v2111_v35 }
 0x1bf   : > { %2551 = shalt.err (!%p2548_p7)
}
 0x1c0   : > { %s2552_s7 = scalar_lea.hbm %s3666_s27, 1024  ;;  %s2556_s10 = scalar_lea.hbm %s3728_s3, 8192 }
 0x1c1   : > { %p2553_p9 = scmp.ne.s32.totalorder %s3666_s27, %s2552_s7  ;;  %p2557_p12 = scmp.lt.s32.totalorder %s3666_s27, %s3728_s3 }
 0x1c2   : > { %p2558_p13 = scmp.lt.s32.totalorder %s2556_s10, %s2552_s7 }
 0x1c3   : > { %p2554_p10 = pnand %p2553_p9, %p2707_p3 }
 0x1c4   : > { %p2559_p0 = por %p2558_p13, %p2557_p12 }
 0x1c5   : > { %p2555_p11 = pneg %p2554_p10 }
 0x1c7   : > { %p2560_p1 = pnand %p2559_p0, %p2555_p11 }
 0x1c9   : > { %2563 = shalt.err (!%p2560_p1)
}
 0x1ca   : > { %s2634_s16 = smov 128   ;;  %s2635_s21 = smov 8  }
 0x1cb   : > { %2378 = dma.vmem_to_hbm [thread:$0]  (%p2707_p3), %s3668_s20, 1024, %s3666_s27, %s3674_s28, %s2634_s16, %s2634_s16, %s2635_s21  }
 0x1cc PF: > { %p2384_p2 = scmp.ge.s32.totalorder %s2630_s19, 2  ;;  %s2151_s24 = sand.u32 1, %s2602_s12  }
 0x1cd   : > { %s2152_s29 = scalar_lea.sflag [#allocation3], %s2151_s24 }
 0x1ce   : > { %p2381_p4 = pnand %p2384_p2, %p2716_p8 }
 0x1d0   : > { %p2382_p5 = pneg %p2381_p4 }
 0x1d2   : > { %2597 = dma.done.wait (%p2382_p5), %s2152_s29, 1024  }
 0x1d3   : > { %2599 = vsyncadd (%p2382_p5), %s2152_s29, 4294966272  ;;  %s16_s19 = sadd.s32 1, %s2630_s19   ;;  %s3774_s12 = smov %s2606_s13 }
 0x1d4   : > { %p13_p6 = scmp.ge.s32.totalorder %s16_s19, 10   ;;  %s3775_s13 = smov %s2610_s14 }
 0x1d5   : > { %s3776_s14 = smov %s2725_s30  ;;  %s3777_s15 = smov %s2622_s17 }
 0x1d6   : > { %s3778_s16 = smov %s2626_s18  ;;  %s3779_s17 = smov %s3782_s22 }
 0x1d7   : > { %s3780_s18 = smov %s3786_s23  ;;  %15 = sbr.rel (!%p13_p6) target bundleno = 5 (0x5), region = 70 }
 0x1dc   :  { %2157 = vsyncpa [#allocation3], 1 }
 0x1dd   :  { %2159 = vsyncpa [#allocation3 + $0x1], 1 }

</bundles_post_ra>
